<compile_context>
chip_gen: v5e
topology: v5e:2x2
jax: 0.10.0
libtpu: 0.0.40
codegen_flags: <defaults>
</compile_context>

<pallas_src>
import jax
import jax.numpy as jnp
from jax.experimental import pallas as pl
from jax.experimental.pallas import tpu as pltpu


def _relu_conv1x1_relu_kernel(x_ref, w_ref, b_ref, o_ref):
    # x_ref: (Cin, TILE)  -- leading batch dim squeezed away
    # w_ref: (Cout, Cin), b_ref: (Cout, 1), o_ref: (Cout, TILE)
    x = jnp.maximum(x_ref[...], 0.0)                                  # relu19
    y = jnp.dot(w_ref[...], x, preferred_element_type=jnp.float32)    # conv2d20 (1x1)
    y = y + b_ref[...]                                                # bias bcast
    o_ref[...] = jnp.maximum(y, 0.0)                                  # relu20


def _default_spatial_splits():
    # v7x has 2 TensorCores per chip -> give each core one spatial block.
    # v5e / v6e have 1 TC -> one full-HW block (minimum per-step overhead).
    try:
        kind = jax.devices()[0].device_kind.lower()
        if "v7" in kind or "7x" in kind:
            return 2
    except Exception:
        pass
    return 1


def relu_conv1x1_relu(x_nchw, weight, bias, *, spatial_splits=None):
    """x_nchw: (N, Cin, H, W) f32; weight: (Cout, Cin, 1, 1); bias: (Cout,)."""
    N, Cin, H, W = x_nchw.shape
    Cout = weight.shape[0]
    HW = H * W

    if spatial_splits is None:
        spatial_splits = _default_spatial_splits()

    # Pure views: no transpose, no pad, no extra HBM traffic.
    x3d = x_nchw.reshape(N, Cin, HW)
    w2d = weight.reshape(Cout, Cin)
    b2d = bias.reshape(Cout, 1)

    if spatial_splits <= 1 or HW <= 128:
        tile_hw = HW                      # equals full array dim -> legal block
    else:
        # Lane-rounded per-split tile so only the trailing block is masked.
        tile_hw = min(HW, ((pl.cdiv(HW, spatial_splits) + 127) // 128) * 128)
    n_hw_blocks = pl.cdiv(HW, tile_hw)

    flops = 2 * N * Cout * Cin * HW
    bytes_accessed = 4 * (x3d.size + w2d.size + b2d.size + N * Cout * HW)
    cost = pl.CostEstimate(flops=flops, transcendentals=0,
                           bytes_accessed=bytes_accessed)

    if N == 1:
        grid = (n_hw_blocks,)
        x_spec = pl.BlockSpec((pl.Squeezed(), Cin, tile_hw), lambda j: (0, 0, j))
        w_spec = pl.BlockSpec((Cout, Cin), lambda j: (0, 0))      # VMEM-resident
        b_spec = pl.BlockSpec((Cout, 1), lambda j: (0, 0))        # VMEM-resident
        o_spec = pl.BlockSpec((pl.Squeezed(), Cout, tile_hw), lambda j: (0, 0, j))
        dims = ("parallel",)
    else:
        grid = (N, n_hw_blocks)
        x_spec = pl.BlockSpec((pl.Squeezed(), Cin, tile_hw), lambda n, j: (n, 0, j))
        w_spec = pl.BlockSpec((Cout, Cin), lambda n, j: (0, 0))
        b_spec = pl.BlockSpec((Cout, 1), lambda n, j: (0, 0))
        o_spec = pl.BlockSpec((pl.Squeezed(), Cout, tile_hw), lambda n, j: (n, 0, j))
        dims = ("parallel", "parallel")

    out3d = pl.pallas_call(
        _relu_conv1x1_relu_kernel,
        out_shape=jax.ShapeDtypeStruct((N, Cout, HW), jnp.float32),
        grid=grid,
        in_specs=[x_spec, w_spec, b_spec],
        out_specs=o_spec,
        compiler_params=pltpu.CompilerParams(dimension_semantics=dims),
        cost_estimate=cost,
    )(x3d, w2d, b2d)

    # Pure view back to NCHW.
    return out3d.reshape(N, Cout, H, W)


if __name__ == "__main__":
    key = jax.random.PRNGKey(0)
    kx, kw, kb = jax.random.split(key, 3)

    # Shapes implied by the module: Conv2d(64, 256, 1x1) on (1, 64, 27, 27).
    N, Cin, H, W, Cout = 1, 64, 27, 27, 256

    x = jax.random.normal(kx, (N, Cin, H, W), dtype=jnp.float32)
    bound = 1.0 / (Cin ** 0.5)
    weight = jax.random.uniform(kw, (Cout, Cin, 1, 1), minval=-bound, maxval=bound,
                                dtype=jnp.float32)
    bias = jax.random.uniform(kb, (Cout,), minval=-bound, maxval=bound,
                              dtype=jnp.float32)

    # Reference (plain JAX) for the fused op.
    xr = jnp.maximum(x, 0.0)
    ref = jnp.einsum("nchw,oc->nohw", xr, weight.reshape(Cout, Cin)) \
        + bias[None, :, None, None]
    ref = jnp.maximum(ref, 0.0)

    # Exercise both the single-block path (v5e/v6e default) and the
    # two-block path (v7x default, masked trailing tile).
    out_default = jax.block_until_ready(relu_conv1x1_relu(x, weight, bias))
    out_split2 = jax.block_until_ready(
        relu_conv1x1_relu(x, weight, bias, spatial_splits=2))

    assert out_default.shape == (N, Cout, H, W)
    assert jnp.allclose(out_default, ref, atol=1e-4, rtol=1e-4)
    assert jnp.allclose(out_split2, ref, atol=1e-4, rtol=1e-4)

    print("KERNEL_OK")
</pallas_src>

<mosaic_0001>
module attributes {stable_mosaic.version = 11 : i64} {
  func.func @_relu_conv1x1_relu_kernel(%arg0: i32, %arg1: memref<1x64x729xf32, #tpu.memory_space<vmem>>, %arg2: memref<256x64xf32, #tpu.memory_space<vmem>>, %arg3: memref<256x1xf32, #tpu.memory_space<vmem>>, %arg4: memref<1x256x729xf32, #tpu.memory_space<vmem>>) attributes {dimension_semantics = [#tpu.dimension_semantics<parallel>], iteration_bounds = array<i64: 1>, scalar_prefetch = 0 : i64, scratch_operands = 0 : i64, tpu.core_type = #tpu.core_type<tc>, window_params = [{transform_indices = @transform_0, window_bounds = array<i64: 1, 64, 729>}, {pipeline_mode = #tpu.pipeline_mode<synchronous>, transform_indices = @transform_1, window_bounds = array<i64: 256, 64>}, {pipeline_mode = #tpu.pipeline_mode<synchronous>, transform_indices = @transform_2, window_bounds = array<i64: 256, 1>}, {transform_indices = @transform_3, window_bounds = array<i64: 1, 256, 729>}]} {
    %c0 = arith.constant 0 : index
    %c0_0 = arith.constant 0 : index
    %c0_1 = arith.constant 0 : index
    %0 = vector.load %arg1[%c0, %c0_0, %c0_1] : memref<1x64x729xf32, #tpu.memory_space<vmem>>, vector<1x64x729xf32>
    %1 = vector.shape_cast %0 : vector<1x64x729xf32> to vector<64x729xf32>
    %cst = arith.constant 0.000000e+00 : f32
    %2 = vector.broadcast %cst : f32 to vector<64x729xf32>
    %3 = arith.maximumf %1, %2 : vector<64x729xf32>
    %c0_2 = arith.constant 0 : index
    %c0_3 = arith.constant 0 : index
    %4 = vector.load %arg2[%c0_2, %c0_3] : memref<256x64xf32, #tpu.memory_space<vmem>>, vector<256x64xf32>
    %cst_4 = arith.constant dense<0.000000e+00> : vector<256x729xf32>
    %5 = tpu.matmul %4, %3, %cst_4 {dimension_numbers = #tpu.dot_dimension_numbers<[1], [0], [0], [1], [0, 0, 1, 1], [], []>} : vector<256x64xf32>, vector<64x729xf32>, vector<256x729xf32> -> vector<256x729xf32>
    %c0_5 = arith.constant 0 : index
    %c0_6 = arith.constant 0 : index
    %6 = vector.load %arg3[%c0_5, %c0_6] : memref<256x1xf32, #tpu.memory_space<vmem>>, vector<256x1xf32>
    %7 = vector.broadcast %6 : vector<256x1xf32> to vector<256x729xf32>
    %8 = arith.addf %5, %7 : vector<256x729xf32>
    %cst_7 = arith.constant 0.000000e+00 : f32
    %9 = vector.broadcast %cst_7 : f32 to vector<256x729xf32>
    %10 = arith.maximumf %8, %9 : vector<256x729xf32>
    %c0_8 = arith.constant 0 : index
    %c0_9 = arith.constant 0 : index
    %c0_10 = arith.constant 0 : index
    %11 = vector.load %arg4[%c0_8, %c0_9, %c0_10] : memref<1x256x729xf32, #tpu.memory_space<vmem>>, vector<1x256x729xf32>
    %12 = vector.shape_cast %11 : vector<1x256x729xf32> to vector<256x729xf32>
    %13 = vector.shape_cast %10 : vector<256x729xf32> to vector<1x256x729xf32>
    tpu.vector_store %arg4[%c0_8, %c0_9, %c0_10], %13 {strides = array<i32>} : memref<1x256x729xf32, #tpu.memory_space<vmem>>, vector<1x256x729xf32>,
    return
  }
  func.func @transform_0(%arg0: i32) -> (i32, i32, i32) {
    %c0_i32 = arith.constant 0 : i32
    %c0_i32_0 = arith.constant 0 : i32
    %c0_i32_1 = arith.constant 0 : i32
    return %c0_i32, %c0_i32_0, %arg0 : i32, i32, i32
  }
  func.func @transform_1(%arg0: i32) -> (i32, i32) {
    %c0_i32 = arith.constant 0 : i32
    %c0_i32_0 = arith.constant 0 : i32
    %c0_i32_1 = arith.constant 0 : i32
    return %c0_i32, %c0_i32_0 : i32, i32
  }
  func.func @transform_2(%arg0: i32) -> (i32, i32) {
    %c0_i32 = arith.constant 0 : i32
    %c0_i32_0 = arith.constant 0 : i32
    %c0_i32_1 = arith.constant 0 : i32
    return %c0_i32, %c0_i32_0 : i32, i32
  }
  func.func @transform_3(%arg0: i32) -> (i32, i32, i32) {
    %c0_i32 = arith.constant 0 : i32
    %c0_i32_0 = arith.constant 0 : i32
    %c0_i32_1 = arith.constant 0 : i32
    return %c0_i32, %c0_i32_0, %arg0 : i32, i32, i32
  }
}

</mosaic_0001>

<bundles_post_ra>
// kernel: tpu_custom_call.1
= control target key start
LH: loop header
LB: loop body
LE: loop exit
PB: predicated region body
PF: predicated region fallthrough
CT: control target
= control target key end

     0   :  { %v1726_v0 = vmov 0   ;;  %vm334_vm0 = vcmask 523264   ;;  %vm1306_vm1 = vcmask 728064   ;;  %s3315_s2 = inlined_call_operand.vmem [shape: f32[256,1], index: 2, kind: input, shape index: {}]   ;;  %s3316_s0 = inlined_call_operand.vmem [shape: f32[1,64,729], index: 0, kind: input, shape index: {}]   ;;  %s3317_s1 = inlined_call_operand.vmem [shape: f32[256,64], index: 1, kind: input, shape index: {}]   ;;  %s3318_s3 = inlined_call_operand.vmem [shape: f32[1,256,729], index: 3, kind: output, shape index: {}]  }
   0x1   :  { %1708 = vset.pattern.permute.xlu1 %v1726_v0  ;;  %v144_v1 = vld [vmem:[%s3315_s2 + $0x10] sm:$0xff]  ;;  %1707 = vset.pattern.permute.xlu0 %v1726_v0  ;;  %v142_v2 = vld [vmem:[%s3315_s2] sm:$0xff]  ;;  %v57_v5 = vld [vmem:[%s3316_s0 + $0x158] sm:$0xff] }
   0x2   :  { %v56_v3 = vld [vmem:[%s3316_s0 + $0x150] sm:$0xff]  ;;  %186 = vperm.xlu1 %1708, %v144_v1   ;;  %176 = vperm.xlu0 %1707, %v142_v2   ;;  %v50_v6 = vld [vmem:[%s3316_s0 + $0x120] sm:$0xff]  ;;  %v51_v7 = vld [vmem:[%s3316_s0 + $0x128] sm:$0xff]  ;;  %v105_v8 = vmax.f32 %v57_v5, 0.0 }
   0x3   :  { %v104_v4 = vmax.f32 %v56_v3, 0.0  ;;  %v98_v9 = vmax.f32 %v50_v6, 0.0  ;;  %v99_v10 = vmax.f32 %v51_v7, 0.0  ;;  %v44_v11 = vld [vmem:[%s3316_s0 + $0xf0] sm:$0xff]  ;;  %v45_v12 = vld [vmem:[%s3316_s0 + $0xf8] sm:$0xff]  ;;  %1709 = vset.pattern.permute.xlu2 %v1726_v0  ;;  %v38_v14 = vld [vmem:[%s3316_s0 + $0xc0] sm:$0xff] }
   0x4   :  { %v92_v13 = vmax.f32 %v44_v11, 0.0  ;;  %v39_v15 = vld [vmem:[%s3316_s0 + $0xc8] sm:$0xff]  ;;  %552 = vmatpush.msra.mxu1 %v105_v8  ;;  %1698 = vmatpush.msra.mxu3 %v105_v8  ;;  %v93_v16 = vmax.f32 %v45_v12, 0.0  ;;  %v86_v17 = vmax.f32 %v38_v14, 0.0  ;;  %v32_v18 = vld [vmem:[%s3316_s0 + $0x90] sm:$0xff]  ;;  %v145_v19 = vld [vmem:[%s3315_s2 + $0x18] sm:$0xff] }
   0x5   :  { %439 = vmatpush.msra.mxu0 %v104_v4  ;;  %1690 = vmatpush.msra.mxu2 %v104_v4  ;;  %v87_v20 = vmax.f32 %v39_v15, 0.0  ;;  %v33_v21 = vld [vmem:[%s3316_s0 + $0x98] sm:$0xff]  ;;  %v26_v22 = vld [vmem:[%s3316_s0 + $0x60] sm:$0xff]  ;;  %v143_v23 = vld [vmem:[%s3315_s2 + $0x8] sm:$0xff]  ;;  %v80_v24 = vmax.f32 %v32_v18, 0.0 }
   0x6   :  { %553 = vmatpush.msra.mxu1 %v99_v10  ;;  %1699 = vmatpush.msra.mxu3 %v99_v10  ;;  %v27_v25 = vld [vmem:[%s3316_s0 + $0x68] sm:$0xff]  ;;  %v81_v26 = vmax.f32 %v33_v21, 0.0  ;;  %v20_v27 = vld [vmem:[%s3316_s0 + $0x30] sm:$0xff]  ;;  %v74_v28 = vmax.f32 %v26_v22, 0.0  ;;  %v21_v29 = vld [vmem:[%s3316_s0 + $0x38] sm:$0xff] }
   0x7   :  { %440 = vmatpush.msra.mxu0 %v98_v9  ;;  %1691 = vmatpush.msra.mxu2 %v98_v9  ;;  %v75_v30 = vmax.f32 %v27_v25, 0.0  ;;  %v14_v31 = vld [vmem:[%s3316_s0] sm:$0xff]  ;;  %v68_v32 = vmax.f32 %v20_v27, 0.0  ;;  %v15_v33 = vld [vmem:[%s3316_s0 + $0x8] sm:$0xff]  ;;  %v69_v34 = vmax.f32 %v21_v29, 0.0  ;;  %v149_v36 = vld [vmem:[%s3315_s2 + $0x38] sm:$0xff] }
   0x8   :  { %554 = vmatpush.msra.mxu1 %v93_v16  ;;  %1700 = vmatpush.msra.mxu3 %v93_v16  ;;  %v62_v35 = vmax.f32 %v14_v31, 0.0  ;;  %v63_v37 = vmax.f32 %v15_v33, 0.0  ;;  %v58_v38 = vld [vmem:[%s3316_s0 + $0x160] sm:$0xff]  ;;  %v59_v39 = vld [vmem:[%s3316_s0 + $0x168] sm:$0xff]  ;;  %v60_v41 = vld [vmem:[%s3316_s0 + $0x170] sm:$0xff] }
   0x9   :  { %441 = vmatpush.msra.mxu0 %v92_v13  ;;  %1692 = vmatpush.msra.mxu2 %v92_v13  ;;  %v1819_v40 = vld [vmem:[%s3317_s1] sm:$0xff]  ;;  %v61_v42 = vld [vmem:[%s3316_s0 + $0x178] sm:$0xff]  ;;  %v106_v44 = vmax.f32 %v58_v38, 0.0  ;;  %v52_v45 = vld [vmem:[%s3316_s0 + $0x130] sm:$0xff]  ;;  %v107_v46 = vmax.f32 %v59_v39, 0.0  ;;  %v108_v49 = vmax.f32 %v60_v41, 0.0 }
   0xa   :  { %191 = vperm.xlu1 %1708, %v145_v19   ;;  %555 = vmatpush.msra.mxu1 %v87_v20  ;;  %v126_v43 = vld [vmem:[%s3317_s1 + $0x80] sm:$0xff]  ;;  %v53_v47 = vld [vmem:[%s3316_s0 + $0x138] sm:$0xff]  ;;  %v148_v48 = vld [vmem:[%s3315_s2 + $0x30] sm:$0xff]  ;;  %v109_v50 = vmax.f32 %v61_v42, 0.0  ;;  %v100_v53 = vmax.f32 %v52_v45, 0.0 }
   0xb   :  { %442 = vmatpush.msra.mxu0 %v86_v17  ;;  %1693 = vmatpush.msra.mxu2 %v86_v17  ;;  %v54_v51 = vld [vmem:[%s3316_s0 + $0x140] sm:$0xff]  ;;  %v55_v52 = vld [vmem:[%s3316_s0 + $0x148] sm:$0xff]  ;;  %v101_v55 = vmax.f32 %v53_v47, 0.0  ;;  %v152_v57 = vld [vmem:[%s3315_s2 + $0x50] sm:$0xff] }
   0xc   :  { %1701 = vmatpush.msra.mxu3 %v87_v20  ;;  %181 = vperm.xlu0 %1707, %v143_v23   ;;  %v146_v54 = vld [vmem:[%s3315_s2 + $0x20] sm:$0xff]  ;;  %v102_v58 = vmax.f32 %v54_v51, 0.0  ;;  %v103_v59 = vmax.f32 %v55_v52, 0.0  ;;  %v48_v60 = vld [vmem:[%s3316_s0 + $0x110] sm:$0xff]  ;;  %v47_v62 = vld [vmem:[%s3316_s0 + $0x108] sm:$0xff] }
   0xd   :  { %443 = vmatpush.msra.mxu0 %v80_v24  ;;  %1694 = vmatpush.msra.mxu2 %v80_v24  ;;  %v46_v56 = vld [vmem:[%s3316_s0 + $0x100] sm:$0xff]  ;;  %v1869_v63 = vld [vmem:[%s3317_s1 + $0x8] sm:$0xff]  ;;  %v49_v0 = vld [vmem:[%s3316_s0 + $0x118] sm:$0xff]  ;;  %v96_v2 = vmax.f32 %v48_v60, 0.0  ;;  %v95_v3 = vmax.f32 %v47_v62, 0.0 }
   0xe   :  { %556 = vmatpush.msra.mxu1 %v81_v26  ;;  %1702 = vmatpush.msra.mxu3 %v81_v26  ;;  %v94_v61 = vmax.f32 %v46_v56, 0.0  ;;  %v127_v1 = vld [vmem:[%s3317_s1 + $0x88] sm:$0xff]  ;;  %v97_v5 = vmax.f32 %v49_v0, 0.0  ;;  %v1895_v8 = vld [vmem:[%s3317_s1 + $0x10] sm:$0xff]  ;;  %v154_v10 = vld [vmem:[%s3315_s2 + $0x60] sm:$0xff] }
   0xf   :  { %444 = vmatpush.msra.mxu0 %v74_v28  ;;  %1695 = vmatpush.msra.mxu2 %v74_v28  ;;  %v151_v4 = vld [vmem:[%s3315_s2 + $0x48] sm:$0xff]  ;;  %v128_v9 = vld [vmem:[%s3317_s1 + $0x90] sm:$0xff]  ;;  %v150_v11 = vld [vmem:[%s3315_s2 + $0x40] sm:$0xff] }
  0x10   :  { %557 = vmatpush.msra.mxu1 %v75_v30  ;;  %1703 = vmatpush.msra.mxu3 %v75_v30  ;;  %v147_v6 = vld [vmem:[%s3315_s2 + $0x28] sm:$0xff]  ;;  %v40_v12 = vld [vmem:[%s3316_s0 + $0xd0] sm:$0xff]  ;;  %v41_v13 = vld [vmem:[%s3316_s0 + $0xd8] sm:$0xff] }
  0x11   :  { %445 = vmatpush.msra.mxu0 %v68_v32  ;;  %1696 = vmatpush.msra.mxu2 %v68_v32  ;;  %v155_v7 = vld [vmem:[%s3315_s2 + $0x68] sm:$0xff]  ;;  %v158_v14 = vld [vmem:[%s3315_s2 + $0x80] sm:$0xff]  ;;  %v88_v15 = vmax.f32 %v40_v12, 0.0  ;;  %v89_v16 = vmax.f32 %v41_v13, 0.0  ;;  %v1930_v21 = vld [vmem:[%s3317_s1 + $0x18] sm:$0xff] }
  0x12   :  { %558 = vmatpush.msra.mxu1 %v69_v34  ;;  %1704 = vmatpush.msra.mxu3 %v69_v34  ;;  %v42_v17 = vld [vmem:[%s3316_s0 + $0xe0] sm:$0xff]  ;;  %v43_v18 = vld [vmem:[%s3316_s0 + $0xe8] sm:$0xff]  ;;  %v129_v22 = vld [vmem:[%s3317_s1 + $0x98] sm:$0xff] }
  0x13   :  { %211 = vperm.xlu1 %1708, %v149_v36   ;;  %446 = vmatpush.msra.mxu0 %v62_v35  ;;  %v90_v19 = vmax.f32 %v42_v17, 0.0  ;;  %v91_v20 = vmax.f32 %v43_v18, 0.0  ;;  %v157_v23 = vld [vmem:[%s3315_s2 + $0x78] sm:$0xff]  ;;  %v1953_v26 = vld [vmem:[%s3317_s1 + $0x20] sm:$0xff]  ;;  %v160_v28 = vld [vmem:[%s3315_s2 + $0x90] sm:$0xff] }
  0x14   :  { %1697 = vmatpush.msra.mxu2 %v62_v35  ;;  %559 = vmatpush.msra.mxu1 %v63_v37  ;;  %v153_v24 = vld [vmem:[%s3315_s2 + $0x58] sm:$0xff]  ;;  %v130_v27 = vld [vmem:[%s3317_s1 + $0xa0] sm:$0xff]  ;;  %v156_v29 = vld [vmem:[%s3315_s2 + $0x70] sm:$0xff] }
  0x15   :  { %1705 = vmatpush.msra.mxu3 %v63_v37  ;;  %1498 = vmatmul.msk.f32.vlgmr.msra.gmra.mxu0 %vm334_vm0, %v1819_v40  ;;  %v161_v25 = vld [vmem:[%s3315_s2 + $0x98] sm:$0xff]  ;;  %v34_v30 = vld [vmem:[%s3316_s0 + $0xa0] sm:$0xff]  ;;  %v35_v31 = vld [vmem:[%s3316_s0 + $0xa8] sm:$0xff] }
  0x16   :  { %1514 = vmatmul.msk.f32.vlgmr.msra.gmra.mxu2 %vm334_vm0, %v126_v43  ;;  %1530 = vmatmul.msk.f32.vlgmr.msra.gmra.mxu1 %vm334_vm0, %v1819_v40  ;;  %v82_v32 = vmax.f32 %v34_v30, 0.0  ;;  %v83_v33 = vmax.f32 %v35_v31, 0.0  ;;  %v164_v34 = vld [vmem:[%s3315_s2 + $0xb0] sm:$0xff]  ;;  %v37_v36 = vld [vmem:[%s3316_s0 + $0xb8] sm:$0xff]  ;;  %v1988_v39 = vld [vmem:[%s3317_s1 + $0x28] sm:$0xff] }
  0x17   :  { %1546 = vmatmul.msk.f32.vlgmr.msra.gmra.mxu3 %vm334_vm0, %v126_v43  ;;  %665 = vmatpush.msrb.mxu2 %v106_v44  ;;  %v36_v35 = vld [vmem:[%s3316_s0 + $0xb0] sm:$0xff]  ;;  %v85_v38 = vmax.f32 %v37_v36, 0.0  ;;  %v131_v41 = vld [vmem:[%s3317_s1 + $0xa8] sm:$0xff]  ;;  %v30_v52 = vld [vmem:[%s3316_s0 + $0x80] sm:$0xff] }
  0x18   :  { %778 = vmatpush.msrb.mxu3 %v107_v46  ;;  %206 = vperm.xlu0 %1707, %v148_v48   ;;  %v84_v37 = vmax.f32 %v36_v35, 0.0  ;;  %v163_v42 = vld [vmem:[%s3315_s2 + $0xa8] sm:$0xff]  ;;  %v2008_v44 = vld [vmem:[%s3317_s1 + $0x30] sm:$0xff]  ;;  %v162_v46 = vld [vmem:[%s3315_s2 + $0xa0] sm:$0xff] }
  0x19   :  { %891 = vmatpush.msrb.mxu0 %v108_v49  ;;  %1004 = vmatpush.msrb.mxu1 %v109_v50  ;;  %v159_v43 = vld [vmem:[%s3315_s2 + $0x88] sm:$0xff]  ;;  %v132_v45 = vld [vmem:[%s3317_s1 + $0xb0] sm:$0xff]  ;;  %v29_v48 = vld [vmem:[%s3316_s0 + $0x78] sm:$0xff] }
  0x1a   :  { %196 = vperm.xlu2 %1709, %v146_v54   ;;  %666 = vmatpush.msrb.mxu2 %v100_v53  ;;  %v28_v47 = vld [vmem:[%s3316_s0 + $0x70] sm:$0xff]  ;;  %v166_v49 = vld [vmem:[%s3315_s2 + $0xc0] sm:$0xff]  ;;  %v77_v51 = vmax.f32 %v29_v48, 0.0  ;;  %v31_v53 = vld [vmem:[%s3316_s0 + $0x88] sm:$0xff]  ;;  %v78_v54 = vmax.f32 %v30_v52, 0.0 }
  0x1b   :  { %226 = vperm.xlu1 %1708, %v152_v57   ;;  %779 = vmatpush.msrb.mxu3 %v101_v55  ;;  %v76_v50 = vmax.f32 %v28_v47, 0.0  ;;  %v79_v55 = vmax.f32 %v31_v53, 0.0  ;;  %v2040_v56 = vld [vmem:[%s3317_s1 + $0x38] sm:$0xff]  ;;  %v134_v60 = vld [vmem:[%s3317_s1 + $0xc0] sm:$0xff]  ;;  %v23_v62 = vld [vmem:[%s3316_s0 + $0x48] sm:$0xff] }
  0x1c   :  { %892 = vmatpush.msrb.mxu0 %v102_v58  ;;  %1005 = vmatpush.msrb.mxu1 %v103_v59  ;;  %v133_v57 = vld [vmem:[%s3317_s1 + $0xb8] sm:$0xff]  ;;  %v167_v58 = vld [vmem:[%s3315_s2 + $0xc8] sm:$0xff]  ;;  %v2057_v59 = vld [vmem:[%s3317_s1 + $0x40] sm:$0xff] }
  0x1d   :  { %1499 = vmatmul.msk.f32.gmra.mxu0 %vm334_vm0, %v1869_v63  ;;  %667 = vmatpush.msrb.mxu2 %v94_v61  ;;  %v22_v61 = vld [vmem:[%s3316_s0 + $0x40] sm:$0xff]  ;;  %v165_v0 = vld [vmem:[%s3315_s2 + $0xb8] sm:$0xff]  ;;  %v136_v12 = vld [vmem:[%s3317_s1 + $0xd0] sm:$0xff] }
  0x1e   :  { %1515 = vmatmul.msk.f32.gmra.mxu2 %vm334_vm0, %v127_v1  ;;  %1531 = vmatmul.msk.f32.gmra.mxu1 %vm334_vm0, %v1869_v63  ;;  %v16_v13 = vld [vmem:[%s3316_s0 + $0x10] sm:$0xff]  ;;  %v2126_v18 = vld [vmem:[%s3317_s1 + $0x58] sm:$0xff] }
  0x1f   :  { %1547 = vmatmul.msk.f32.gmra.mxu3 %vm334_vm0, %v127_v1  ;;  %893 = vmatpush.msrb.mxu0 %v96_v2  ;;  %v70_v1 = vmax.f32 %v22_v61, 0.0  ;;  %v71_v2 = vmax.f32 %v23_v62, 0.0  ;;  %v2218_v48 = vld [vmem:[%s3317_s1 + $0x78] sm:$0xff] }
  0x20   :  { %221 = vperm.xlu0 %1707, %v151_v4   ;;  %780 = vmatpush.msrb.mxu3 %v95_v3  ;;  %v24_v3 = vld [vmem:[%s3316_s0 + $0x50] sm:$0xff]  ;;  %v25_v4 = vld [vmem:[%s3316_s0 + $0x58] sm:$0xff] }
  0x21   :  { %1006 = vmatpush.msrb.mxu1 %v97_v5  ;;  %668 = vmatpush.msrb.mxu2 %v88_v15  ;;  %v72_v5 = vmax.f32 %v24_v3, 0.0  ;;  %v170_v15 = vld [vmem:[%s3315_s2 + $0xe0] sm:$0xff] }
  0x22   :  { %201 = vperm.xlu2 %1709, %v147_v6   ;;  %781 = vmatpush.msrb.mxu3 %v89_v16  ;;  %v73_v6 = vmax.f32 %v25_v4, 0.0  ;;  %v64_v16 = vmax.f32 %v16_v13, 0.0 }
  0x23   :  { %241 = vperm.xlu1 %1708, %v155_v7   ;;  %894 = vmatpush.msrb.mxu0 %v90_v19  ;;  %v2086_v7 = vld [vmem:[%s3317_s1 + $0x48] sm:$0xff]  ;;  %v18_v19 = vld [vmem:[%s3316_s0 + $0x20] sm:$0xff] }
  0x24   :  { %1007 = vmatpush.msrb.mxu1 %v91_v20  ;;  %669 = vmatpush.msrb.mxu2 %v82_v32  ;;  %v19_v20 = vld [vmem:[%s3316_s0 + $0x28] sm:$0xff]  ;;  %v172_v32 = vld [vmem:[%s3315_s2 + $0xf0] sm:$0xff] }
  0x25   :  { %1500 = vmatmul.msk.f32.gmra.mxu0 %vm334_vm0, %v1895_v8  ;;  %782 = vmatpush.msrb.mxu3 %v83_v33  ;;  %v2172_v33 = vld [vmem:[%s3317_s1 + $0x68] sm:$0xff] }
  0x26   :  { %1516 = vmatmul.msk.f32.gmra.mxu2 %vm334_vm0, %v128_v9  ;;  %1532 = vmatmul.msk.f32.gmra.mxu1 %vm334_vm0, %v1895_v8 }
  0x27   :  { %1548 = vmatmul.msk.f32.gmra.mxu3 %vm334_vm0, %v128_v9  ;;  %895 = vmatpush.msrb.mxu0 %v84_v37  ;;  %v135_v9 = vld [vmem:[%s3317_s1 + $0xc8] sm:$0xff]  ;;  %v173_v37 = vld [vmem:[%s3315_s2 + $0xf8] sm:$0xff] }
  0x28   :  { %236 = vperm.xlu0 %1707, %v154_v10   ;;  %1008 = vmatpush.msrb.mxu1 %v85_v38  ;;  %v169_v10 = vld [vmem:[%s3315_s2 + $0xd8] sm:$0xff] }
  0x29   :  { %670 = vmatpush.msrb.mxu2 %v76_v50  ;;  %783 = vmatpush.msrb.mxu3 %v77_v51 }
  0x2a   :  { %216 = vperm.xlu2 %1709, %v150_v11   ;;  %896 = vmatpush.msrb.mxu0 %v78_v54  ;;  %v2103_v11 = vld [vmem:[%s3317_s1 + $0x50] sm:$0xff] }
  0x2b   :  { %256 = vperm.xlu1 %1708, %v158_v14   ;;  %1009 = vmatpush.msrb.mxu1 %v79_v55  ;;  %v17_v14 = vld [vmem:[%s3316_s0 + $0x18] sm:$0xff] }
  0x2c   :  { %671 = vmatpush.msrb.mxu2 %v70_v1  ;;  %784 = vmatpush.msrb.mxu3 %v71_v2  ;;  %v65_v17 = vmax.f32 %v17_v14, 0.0 }
  0x2d   :  { %1501 = vmatmul.msk.f32.gmra.mxu0 %vm334_vm0, %v1930_v21  ;;  %1010 = vmatpush.msrb.mxu1 %v73_v6 }
  0x2e   :  { %1517 = vmatmul.msk.f32.gmra.mxu2 %vm334_vm0, %v129_v22  ;;  %1533 = vmatmul.msk.f32.gmra.mxu1 %vm334_vm0, %v1930_v21 }
  0x2f   :  { %1549 = vmatmul.msk.f32.gmra.mxu3 %vm334_vm0, %v129_v22  ;;  %897 = vmatpush.msrb.mxu0 %v72_v5  ;;  %v137_v22 = vld [vmem:[%s3317_s1 + $0xd8] sm:$0xff] }
  0x30   :  { %251 = vperm.xlu0 %1707, %v157_v23   ;;  %672 = vmatpush.msrb.mxu2 %v64_v16  ;;  %v66_v23 = vmax.f32 %v18_v19, 0.0 }
  0x31   :  { %785 = vmatpush.msrb.mxu3 %v65_v17 }
  0x32   :  { %231 = vperm.xlu2 %1709, %v153_v24   ;;  %v67_v24 = vmax.f32 %v19_v20, 0.0  ;;  %898 = vmatpush.msrb.mxu0 %v66_v23 }
  0x33   :  { %271 = vperm.xlu1 %1708, %v161_v25   ;;  %v168_v25 = vld [vmem:[%s3315_s2 + $0xd0] sm:$0xff] }
  0x34   :  { %1011 = vmatpush.msrb.mxu1 %v67_v24 }
  0x35   :  { %1502 = vmatmul.msk.f32.gmra.mxu0 %vm334_vm0, %v1953_v26 }
  0x36   :  { %1518 = vmatmul.msk.f32.gmra.mxu2 %vm334_vm0, %v130_v27  ;;  %1534 = vmatmul.msk.f32.gmra.mxu1 %vm334_vm0, %v1953_v26 }
  0x37   :  { %1550 = vmatmul.msk.f32.gmra.mxu3 %vm334_vm0, %v130_v27  ;;  %v2149_v27 = vld [vmem:[%s3317_s1 + $0x60] sm:$0xff] }
  0x38   :  { %266 = vperm.xlu0 %1707, %v160_v28   ;;  %v138_v28 = vld [vmem:[%s3317_s1 + $0xe0] sm:$0xff] }
  0x3a   :  { %246 = vperm.xlu2 %1709, %v156_v29  }
  0x3b   :  { %286 = vperm.xlu1 %1708, %v164_v34   ;;  %v139_v34 = vld [vmem:[%s3317_s1 + $0xe8] sm:$0xff] }
  0x3d   :  { %1503 = vmatmul.msk.f32.gmra.mxu0 %vm334_vm0, %v1988_v39 }
  0x3e   :  { %1519 = vmatmul.msk.f32.gmra.mxu2 %vm334_vm0, %v131_v41  ;;  %1535 = vmatmul.msk.f32.gmra.mxu1 %vm334_vm0, %v1988_v39 }
  0x3f   :  { %1551 = vmatmul.msk.f32.gmra.mxu3 %vm334_vm0, %v131_v41  ;;  %v2195_v41 = vld [vmem:[%s3317_s1 + $0x70] sm:$0xff] }
  0x40   :  { %281 = vperm.xlu0 %1707, %v163_v42   ;;  %v140_v42 = vld [vmem:[%s3317_s1 + $0xf0] sm:$0xff] }
  0x42   :  { %261 = vperm.xlu2 %1709, %v159_v43  }
  0x43   :  { %301 = vperm.xlu1 %1708, %v167_v58  }
  0x45   :  { %1504 = vmatmul.msk.f32.gmra.mxu0 %vm334_vm0, %v2008_v44 }
  0x46   :  { %1520 = vmatmul.msk.f32.gmra.mxu2 %vm334_vm0, %v132_v45  ;;  %1536 = vmatmul.msk.f32.gmra.mxu1 %vm334_vm0, %v2008_v44 }
  0x47   :  { %1552 = vmatmul.msk.f32.gmra.mxu3 %vm334_vm0, %v132_v45 }
  0x48   :  { %296 = vperm.xlu0 %1707, %v166_v49   ;;  %v141_v49 = vld [vmem:[%s3317_s1 + $0xf8] sm:$0xff] }
  0x4a   :  { %276 = vperm.xlu2 %1709, %v162_v46   ;;  %v171_v46 = vld [vmem:[%s3315_s2 + $0xe8] sm:$0xff] }
  0x4b   :  { %316 = vperm.xlu1 %1708, %v170_v15  }
  0x4d   :  { %1505 = vmatmul.msk.f32.gmra.mxu0 %vm334_vm0, %v2040_v56 }
  0x4e   :  { %1521 = vmatmul.msk.f32.gmra.mxu2 %vm334_vm0, %v133_v57  ;;  %1537 = vmatmul.msk.f32.gmra.mxu1 %vm334_vm0, %v2040_v56 }
  0x4f   :  { %1553 = vmatmul.msk.f32.gmra.mxu3 %vm334_vm0, %v133_v57 }
  0x50   :  { %311 = vperm.xlu0 %1707, %v169_v10  }
  0x52   :  { %291 = vperm.xlu2 %1709, %v165_v0  }
  0x53   :  { %331 = vperm.xlu1 %1708, %v173_v37  }
  0x55   :  { %1506 = vmatmul.msk.f32.gmra.mxu0 %vm334_vm0, %v2057_v59 }
  0x56   :  { %1522 = vmatmul.msk.f32.gmra.mxu2 %vm334_vm0, %v134_v60  ;;  %1538 = vmatmul.msk.f32.gmra.mxu1 %vm334_vm0, %v2057_v59 }
  0x57   :  { %1554 = vmatmul.msk.f32.gmra.mxu3 %vm334_vm0, %v134_v60 }
  0x58   :  { %326 = vperm.xlu0 %1707, %v172_v32  }
  0x5a   :  { %306 = vperm.xlu2 %1709, %v168_v25  }
  0x5d   :  { %1507 = vmatmul.msk.f32.gmra.mxu0 %vm334_vm0, %v2086_v7 }
  0x5e   :  { %1523 = vmatmul.msk.f32.gmra.mxu2 %vm334_vm0, %v135_v9  ;;  %1539 = vmatmul.msk.f32.gmra.mxu1 %vm334_vm0, %v2086_v7 }
  0x5f   :  { %1555 = vmatmul.msk.f32.gmra.mxu3 %vm334_vm0, %v135_v9 }
  0x62   :  { %321 = vperm.xlu2 %1709, %v171_v46  }
  0x65   :  { %1508 = vmatmul.msk.f32.gmra.mxu0 %vm334_vm0, %v2103_v11 }
  0x66   :  { %1524 = vmatmul.msk.f32.gmra.mxu2 %vm334_vm0, %v136_v12  ;;  %1540 = vmatmul.msk.f32.gmra.mxu1 %vm334_vm0, %v2103_v11 }
  0x67   :  { %1556 = vmatmul.msk.f32.gmra.mxu3 %vm334_vm0, %v136_v12 }
  0x6d   :  { %1509 = vmatmul.msk.f32.gmra.mxu0 %vm334_vm0, %v2126_v18 }
  0x6e   :  { %1525 = vmatmul.msk.f32.gmra.mxu2 %vm334_vm0, %v137_v22  ;;  %1541 = vmatmul.msk.f32.gmra.mxu1 %vm334_vm0, %v2126_v18 }
  0x6f   :  { %1557 = vmatmul.msk.f32.gmra.mxu3 %vm334_vm0, %v137_v22 }
  0x74   :  { %v2154_v29 = vpop.permute.xlu1 %186  ;;  %v2156_v30 = vpop.permute.xlu2 %196 }
  0x75   :  { %1510 = vmatmul.msk.f32.gmra.mxu0 %vm334_vm0, %v2149_v27  ;;  %v2163_v31 = vpop.permute.xlu0 %176 }
  0x76   :  { %1526 = vmatmul.msk.f32.gmra.mxu2 %vm334_vm0, %v138_v28  ;;  %1542 = vmatmul.msk.f32.gmra.mxu1 %vm334_vm0, %v2149_v27 }
  0x77   :  { %1558 = vmatmul.msk.f32.gmra.mxu3 %vm334_vm0, %v138_v28 }
  0x7c   :  { %v2177_v35 = vpop.permute.xlu1 %191  ;;  %v2179_v36 = vpop.permute.xlu2 %201 }
  0x7d   :  { %1511 = vmatmul.msk.f32.gmra.mxu0 %vm334_vm0, %v2172_v33 }
  0x7e   :  { %1527 = vmatmul.msk.f32.gmra.mxu2 %vm334_vm0, %v139_v34  ;;  %1543 = vmatmul.msk.f32.gmra.mxu1 %vm334_vm0, %v2172_v33  ;;  %v2190_v38 = vpop.permute.xlu0 %181 }
  0x7f   :  { %1559 = vmatmul.msk.f32.gmra.mxu3 %vm334_vm0, %v139_v34 }
  0x84   :  { %v2200_v43 = vpop.permute.xlu2 %216 }
  0x85   :  { %1512 = vmatmul.msk.f32.gmra.mxu0 %vm334_vm0, %v2195_v41  ;;  %v2204_v45 = vpop.permute.xlu1 %211 }
  0x86   :  { %1528 = vmatmul.msk.f32.gmra.mxu2 %vm334_vm0, %v140_v42  ;;  %1544 = vmatmul.msk.f32.gmra.mxu1 %vm334_vm0, %v2195_v41 }
  0x87   :  { %1560 = vmatmul.msk.f32.gmra.mxu3 %vm334_vm0, %v140_v42 }
  0x8a   :  { %v2213_v47 = vpop.permute.xlu0 %206 }
  0x8c   :  { %v2223_v50 = vpop.permute.xlu2 %231 }
  0x8d   :  { %1513 = vmatmul.msk.f32.gmra.mxu0 %vm334_vm0, %v2218_v48  ;;  %v2227_v51 = vpop.permute.xlu1 %226 }
  0x8e   :  { %1529 = vmatmul.msk.f32.gmra.mxu2 %vm334_vm0, %v141_v49  ;;  %1545 = vmatmul.msk.f32.gmra.mxu1 %vm334_vm0, %v2218_v48 }
  0x8f   :  { %1561 = vmatmul.msk.f32.gmra.mxu3 %vm334_vm0, %v141_v49 }
  0x92   :  { %v2233_v52 = vpop.permute.xlu0 %221  ;;  %v448_v53 = vpop.f32.mrf.mxu0 }
  0x93   :  { %v449_v54 = vadd.f32 %v448_v53, %v2163_v31  ;;  %v561_v55 = vpop.f32.mrf.mxu1 }
  0x94   :  { %v562_v57 = vadd.f32 %v561_v55, %v2163_v31  ;;  %v2241_v61 = vpop.permute.xlu2 %246 }
  0x95   :  { %v1109_v58 = vmax.f32 %v449_v54, 0.0  ;;  %1626 = vmatmul.msk.f32.vlgmr.msrb.gmra.mxu0 %vm334_vm0, %v1819_v40  ;;  %v2239_v60 = vpop.permute.xlu1 %241 }
  0x96   :  { %v1110_v62 = vmax.f32 %v562_v57, 0.0  ;;  %1562 = vmatmul.msk.f32.vlgmr.msrb.gmra.mxu2 %vm334_vm0, %v1819_v40  ;;  %1658 = vmatmul.msk.f32.vlgmr.msrb.gmra.mxu1 %vm334_vm0, %v1819_v40 }
  0x97   :  { %1301 = vst [vmem:[%s3318_s3] sm:$0xff] %v1109_v58  ;;  %1594 = vmatmul.msk.f32.vlgmr.msrb.gmra.mxu3 %vm334_vm0, %v1819_v40 }
  0x98   :  { %1302 = vst [vmem:[%s3318_s3 + $0x8] sm:$0xff] %v1110_v62 }
  0x99   :  { %v496_v0 = vpop.f32.mrf.mxu2 }
  0x9a   :  { %v2255_v1 = vpop.permute.xlu0 %236  ;;  %v609_v2 = vpop.f32.mrf.mxu3 }
  0x9b   :  { %v451_v3 = vpop.f32.mrf.mxu0  ;;  %v564_v4 = vpop.f32.mrf.mxu1 }
  0x9c   :  { %v452_v5 = vadd.f32 %v451_v3, %v2190_v38  ;;  %v565_v6 = vadd.f32 %v564_v4, %v2190_v38  ;;  %v2271_v14 = vpop.permute.xlu2 %261 }
  0x9d   :  { %1627 = vmatmul.msk.f32.gmra.mxu0 %vm334_vm0, %v1869_v63  ;;  %v2261_v9 = vpop.permute.xlu1 %256 }
  0x9e   :  { %v1115_v40 = vmax.f32 %v452_v5, 0.0  ;;  %v1116_v10 = vmax.f32 %v565_v6, 0.0  ;;  %1563 = vmatmul.msk.f32.gmra.mxu2 %vm334_vm0, %v1869_v63  ;;  %1659 = vmatmul.msk.f32.gmra.mxu1 %vm334_vm0, %v1869_v63  ;;  %v497_v12 = vadd.f32 %v496_v0, %v2261_v9  ;;  %v610_v13 = vadd.f32 %v609_v2, %v2261_v9 }
  0x9f   :  { %1595 = vmatmul.msk.f32.gmra.mxu3 %vm334_vm0, %v1869_v63 }
  0xa0   :  { %1308 = vst [vmem:[%s3318_s3 + $0x30] sm:$0xff] %v1115_v40  ;;  %v1205_v15 = vmax.f32 %v497_v12, 0.0  ;;  %v1206_v16 = vmax.f32 %v610_v13, 0.0 }
  0xa1   :  { %1309 = vst [vmem:[%s3318_s3 + $0x38] sm:$0xff] %v1116_v10  ;;  %v499_v17 = vpop.f32.mrf.mxu2 }
  0xa2   :  { %1398 = vst [vmem:[%s3318_s3 + $0x300] sm:$0xff] %v1205_v15  ;;  %v2282_v19 = vpop.permute.xlu0 %251  ;;  %v500_v63 = vadd.f32 %v499_v17, %v2271_v14  ;;  %v612_v20 = vpop.f32.mrf.mxu3 }
  0xa3   :  { %1399 = vst [vmem:[%s3318_s3 + $0x308] sm:$0xff] %v1206_v16  ;;  %v613_v22 = vadd.f32 %v612_v20, %v2271_v14  ;;  %v454_v23 = vpop.f32.mrf.mxu0  ;;  %v567_v24 = vpop.f32.mrf.mxu1 }
  0xa4   :  { %v1211_v25 = vmax.f32 %v500_v63, 0.0  ;;  %v455_v28 = vadd.f32 %v454_v23, %v2154_v29  ;;  %v568_v32 = vadd.f32 %v567_v24, %v2154_v29  ;;  %v2357_v23 = vpop.permute.xlu2 %276 }
  0xa5   :  { %v1212_v34 = vmax.f32 %v613_v22, 0.0  ;;  %1628 = vmatmul.msk.f32.gmra.mxu0 %vm334_vm0, %v1895_v8  ;;  %v2328_v5 = vpop.permute.xlu1 %271 }
  0xa6   :  { %1404 = vst [vmem:[%s3318_s3 + $0x330] sm:$0xff] %v1211_v25  ;;  %v1121_v37 = vmax.f32 %v455_v28, 0.0  ;;  %v1122_v42 = vmax.f32 %v568_v32, 0.0  ;;  %1564 = vmatmul.msk.f32.gmra.mxu2 %vm334_vm0, %v1895_v8  ;;  %1660 = vmatmul.msk.f32.gmra.mxu1 %vm334_vm0, %v1895_v8 }
  0xa7   :  { %1405 = vst [vmem:[%s3318_s3 + $0x338] sm:$0xff] %v1212_v34  ;;  %1596 = vmatmul.msk.f32.gmra.mxu3 %vm334_vm0, %v1895_v8 }
  0xa8   :  { %1314 = vst [vmem:[%s3318_s3 + $0x60] sm:$0xff] %v1121_v37 }
  0xa9   :  { %1315 = vst [vmem:[%s3318_s3 + $0x68] sm:$0xff] %v1122_v42  ;;  %v502_v46 = vpop.f32.mrf.mxu2 }
  0xaa   :  { %v2311_v49 = vpop.permute.xlu0 %266  ;;  %v615_v53 = vpop.f32.mrf.mxu3 }
  0xab   :  { %v503_v54 = vadd.f32 %v502_v46, %v2311_v49  ;;  %v616_v55 = vadd.f32 %v615_v53, %v2311_v49  ;;  %v457_v57 = vpop.f32.mrf.mxu0  ;;  %v570_v58 = vpop.f32.mrf.mxu1 }
  0xac   :  { %v458_v8 = vadd.f32 %v457_v57, %v2177_v35  ;;  %v571_v62 = vadd.f32 %v570_v58, %v2177_v35 }
  0xad   :  { %v1217_v0 = vmax.f32 %v503_v54, 0.0  ;;  %v1218_v2 = vmax.f32 %v616_v55, 0.0  ;;  %1629 = vmatmul.msk.f32.gmra.mxu0 %vm334_vm0, %v1930_v21 }
  0xae   :  { %v1127_v3 = vmax.f32 %v458_v8, 0.0  ;;  %v1128_v4 = vmax.f32 %v571_v62, 0.0  ;;  %1565 = vmatmul.msk.f32.gmra.mxu2 %vm334_vm0, %v1930_v21  ;;  %1661 = vmatmul.msk.f32.gmra.mxu1 %vm334_vm0, %v1930_v21 }
  0xaf   :  { %1410 = vst [vmem:[%s3318_s3 + $0x360] sm:$0xff] %v1217_v0  ;;  %1597 = vmatmul.msk.f32.gmra.mxu3 %vm334_vm0, %v1930_v21 }
  0xb0   :  { %1411 = vst [vmem:[%s3318_s3 + $0x368] sm:$0xff] %v1218_v2 }
  0xb1   :  { %1320 = vst [vmem:[%s3318_s3 + $0x90] sm:$0xff] %v1127_v3  ;;  %v505_v6 = vpop.f32.mrf.mxu2 }
  0xb2   :  { %1321 = vst [vmem:[%s3318_s3 + $0x98] sm:$0xff] %v1128_v4  ;;  %v506_v40 = vadd.f32 %v505_v6, %v2328_v5  ;;  %v618_v10 = vpop.f32.mrf.mxu3  ;;  %v2383_v57 = vpop.permute.xlu0 %281 }
  0xb3   :  { %v619_v21 = vadd.f32 %v618_v10, %v2328_v5  ;;  %v460_v12 = vpop.f32.mrf.mxu0  ;;  %v573_v13 = vpop.f32.mrf.mxu1 }
  0xb4   :  { %v1223_v15 = vmax.f32 %v506_v40, 0.0  ;;  %v461_v16 = vadd.f32 %v460_v12, %v2156_v30  ;;  %v574_v17 = vadd.f32 %v573_v13, %v2156_v30  ;;  %v2409_v12 = vpop.permute.xlu1 %286 }
  0xb5   :  { %v1224_v63 = vmax.f32 %v619_v21, 0.0  ;;  %1630 = vmatmul.msk.f32.gmra.mxu0 %vm334_vm0, %v1953_v26 }
  0xb6   :  { %1416 = vst [vmem:[%s3318_s3 + $0x390] sm:$0xff] %v1223_v15  ;;  %v1133_v20 = vmax.f32 %v461_v16, 0.0  ;;  %v1134_v22 = vmax.f32 %v574_v17, 0.0  ;;  %1566 = vmatmul.msk.f32.gmra.mxu2 %vm334_vm0, %v1953_v26  ;;  %1662 = vmatmul.msk.f32.gmra.mxu1 %vm334_vm0, %v1953_v26 }
  0xb7   :  { %1417 = vst [vmem:[%s3318_s3 + $0x398] sm:$0xff] %v1224_v63  ;;  %1598 = vmatmul.msk.f32.gmra.mxu3 %vm334_vm0, %v1953_v26 }
  0xb8   :  { %1326 = vst [vmem:[%s3318_s3 + $0xc0] sm:$0xff] %v1133_v20 }
  0xb9   :  { %1327 = vst [vmem:[%s3318_s3 + $0xc8] sm:$0xff] %v1134_v22  ;;  %v508_v24 = vpop.f32.mrf.mxu2 }
  0xba   :  { %v509_v25 = vadd.f32 %v508_v24, %v2357_v23  ;;  %v621_v28 = vpop.f32.mrf.mxu3 }
  0xbb   :  { %v622_v32 = vadd.f32 %v621_v28, %v2357_v23  ;;  %v463_v34 = vpop.f32.mrf.mxu0  ;;  %v576_v37 = vpop.f32.mrf.mxu1 }
  0xbc   :  { %v1229_v42 = vmax.f32 %v509_v25, 0.0  ;;  %v464_v26 = vadd.f32 %v463_v34, %v2179_v36  ;;  %v577_v46 = vadd.f32 %v576_v37, %v2179_v36  ;;  %v2435_v34 = vpop.permute.xlu2 %291 }
  0xbd   :  { %v1230_v53 = vmax.f32 %v622_v32, 0.0  ;;  %1631 = vmatmul.msk.f32.gmra.mxu0 %vm334_vm0, %v1988_v39 }
  0xbe   :  { %1422 = vst [vmem:[%s3318_s3 + $0x3c0] sm:$0xff] %v1229_v42  ;;  %v1139_v54 = vmax.f32 %v464_v26, 0.0  ;;  %v1140_v55 = vmax.f32 %v577_v46, 0.0  ;;  %1567 = vmatmul.msk.f32.gmra.mxu2 %vm334_vm0, %v1988_v39  ;;  %1663 = vmatmul.msk.f32.gmra.mxu1 %vm334_vm0, %v1988_v39 }
  0xbf   :  { %1423 = vst [vmem:[%s3318_s3 + $0x3c8] sm:$0xff] %v1230_v53  ;;  %1599 = vmatmul.msk.f32.gmra.mxu3 %vm334_vm0, %v1988_v39 }
  0xc0   :  { %1332 = vst [vmem:[%s3318_s3 + $0xf0] sm:$0xff] %v1139_v54 }
  0xc1   :  { %1333 = vst [vmem:[%s3318_s3 + $0xf8] sm:$0xff] %v1140_v55  ;;  %v511_v58 = vpop.f32.mrf.mxu2 }
  0xc2   :  { %v512_v8 = vadd.f32 %v511_v58, %v2383_v57  ;;  %v624_v62 = vpop.f32.mrf.mxu3 }
  0xc3   :  { %v625_v0 = vadd.f32 %v624_v62, %v2383_v57  ;;  %v466_v2 = vpop.f32.mrf.mxu0  ;;  %v579_v3 = vpop.f32.mrf.mxu1 }
  0xc4   :  { %v1235_v4 = vmax.f32 %v512_v8, 0.0  ;;  %v467_v39 = vadd.f32 %v466_v2, %v2213_v47  ;;  %v580_v6 = vadd.f32 %v579_v3, %v2213_v47  ;;  %v2461_v2 = vpop.permute.xlu0 %296 }
  0xc5   :  { %v1236_v40 = vmax.f32 %v625_v0, 0.0  ;;  %1632 = vmatmul.msk.f32.gmra.mxu0 %vm334_vm0, %v2008_v44 }
  0xc6   :  { %1428 = vst [vmem:[%s3318_s3 + $0x3f0] sm:$0xff] %v1235_v4  ;;  %v1145_v10 = vmax.f32 %v467_v39, 0.0  ;;  %v1146_v21 = vmax.f32 %v580_v6, 0.0  ;;  %1568 = vmatmul.msk.f32.gmra.mxu2 %vm334_vm0, %v2008_v44  ;;  %1664 = vmatmul.msk.f32.gmra.mxu1 %vm334_vm0, %v2008_v44 }
  0xc7   :  { %1429 = vst [vmem:[%s3318_s3 + $0x3f8] sm:$0xff] %v1236_v40  ;;  %1600 = vmatmul.msk.f32.gmra.mxu3 %vm334_vm0, %v2008_v44 }
  0xc8   :  { %1338 = vst [vmem:[%s3318_s3 + $0x120] sm:$0xff] %v1145_v10 }
  0xc9   :  { %1339 = vst [vmem:[%s3318_s3 + $0x128] sm:$0xff] %v1146_v21  ;;  %v514_v13 = vpop.f32.mrf.mxu2 }
  0xca   :  { %v515_v15 = vadd.f32 %v514_v13, %v2409_v12  ;;  %v627_v16 = vpop.f32.mrf.mxu3 }
  0xcb   :  { %v628_v17 = vadd.f32 %v627_v16, %v2409_v12  ;;  %v469_v63 = vpop.f32.mrf.mxu0  ;;  %v582_v20 = vpop.f32.mrf.mxu1 }
  0xcc   :  { %v1241_v22 = vmax.f32 %v515_v15, 0.0  ;;  %v470_v44 = vadd.f32 %v469_v63, %v2204_v45  ;;  %v583_v24 = vadd.f32 %v582_v20, %v2204_v45  ;;  %v2487_v63 = vpop.permute.xlu1 %301 }
  0xcd   :  { %v1242_v25 = vmax.f32 %v628_v17, 0.0  ;;  %1633 = vmatmul.msk.f32.gmra.mxu0 %vm334_vm0, %v2040_v56 }
  0xce   :  { %1434 = vst [vmem:[%s3318_s3 + $0x420] sm:$0xff] %v1241_v22  ;;  %v1151_v28 = vmax.f32 %v470_v44, 0.0  ;;  %v1152_v32 = vmax.f32 %v583_v24, 0.0  ;;  %1569 = vmatmul.msk.f32.gmra.mxu2 %vm334_vm0, %v2040_v56  ;;  %1665 = vmatmul.msk.f32.gmra.mxu1 %vm334_vm0, %v2040_v56 }
  0xcf   :  { %1435 = vst [vmem:[%s3318_s3 + $0x428] sm:$0xff] %v1242_v25  ;;  %1601 = vmatmul.msk.f32.gmra.mxu3 %vm334_vm0, %v2040_v56 }
  0xd0   :  { %1344 = vst [vmem:[%s3318_s3 + $0x150] sm:$0xff] %v1151_v28 }
  0xd1   :  { %1345 = vst [vmem:[%s3318_s3 + $0x158] sm:$0xff] %v1152_v32  ;;  %v517_v37 = vpop.f32.mrf.mxu2 }
  0xd2   :  { %v518_v42 = vadd.f32 %v517_v37, %v2435_v34  ;;  %v630_v26 = vpop.f32.mrf.mxu3 }
  0xd3   :  { %v631_v46 = vadd.f32 %v630_v26, %v2435_v34  ;;  %v472_v53 = vpop.f32.mrf.mxu0  ;;  %v585_v54 = vpop.f32.mrf.mxu1 }
  0xd4   :  { %v1247_v55 = vmax.f32 %v518_v42, 0.0  ;;  %v473_v56 = vadd.f32 %v472_v53, %v2200_v43  ;;  %v586_v58 = vadd.f32 %v585_v54, %v2200_v43  ;;  %v2513_v53 = vpop.permute.xlu2 %306 }
  0xd5   :  { %v1248_v8 = vmax.f32 %v631_v46, 0.0  ;;  %1634 = vmatmul.msk.f32.gmra.mxu0 %vm334_vm0, %v2057_v59 }
  0xd6   :  { %1440 = vst [vmem:[%s3318_s3 + $0x450] sm:$0xff] %v1247_v55  ;;  %v1157_v62 = vmax.f32 %v473_v56, 0.0  ;;  %v1158_v0 = vmax.f32 %v586_v58, 0.0  ;;  %1570 = vmatmul.msk.f32.gmra.mxu2 %vm334_vm0, %v2057_v59  ;;  %1666 = vmatmul.msk.f32.gmra.mxu1 %vm334_vm0, %v2057_v59 }
  0xd7   :  { %1441 = vst [vmem:[%s3318_s3 + $0x458] sm:$0xff] %v1248_v8  ;;  %1602 = vmatmul.msk.f32.gmra.mxu3 %vm334_vm0, %v2057_v59 }
  0xd8   :  { %1350 = vst [vmem:[%s3318_s3 + $0x180] sm:$0xff] %v1157_v62 }
  0xd9   :  { %1351 = vst [vmem:[%s3318_s3 + $0x188] sm:$0xff] %v1158_v0  ;;  %v520_v3 = vpop.f32.mrf.mxu2 }
  0xda   :  { %v521_v4 = vadd.f32 %v520_v3, %v2461_v2  ;;  %v633_v39 = vpop.f32.mrf.mxu3 }
  0xdb   :  { %v634_v6 = vadd.f32 %v633_v39, %v2461_v2  ;;  %v475_v40 = vpop.f32.mrf.mxu0  ;;  %v588_v10 = vpop.f32.mrf.mxu1 }
  0xdc   :  { %v1253_v21 = vmax.f32 %v521_v4, 0.0  ;;  %v476_v59 = vadd.f32 %v475_v40, %v2233_v52  ;;  %v589_v13 = vadd.f32 %v588_v10, %v2233_v52  ;;  %v2539_v40 = vpop.permute.xlu0 %311 }
  0xdd   :  { %v1254_v15 = vmax.f32 %v634_v6, 0.0  ;;  %1635 = vmatmul.msk.f32.gmra.mxu0 %vm334_vm0, %v2086_v7 }
  0xde   :  { %1446 = vst [vmem:[%s3318_s3 + $0x480] sm:$0xff] %v1253_v21  ;;  %v1163_v16 = vmax.f32 %v476_v59, 0.0  ;;  %v1164_v17 = vmax.f32 %v589_v13, 0.0  ;;  %1571 = vmatmul.msk.f32.gmra.mxu2 %vm334_vm0, %v2086_v7  ;;  %1667 = vmatmul.msk.f32.gmra.mxu1 %vm334_vm0, %v2086_v7 }
  0xdf   :  { %1447 = vst [vmem:[%s3318_s3 + $0x488] sm:$0xff] %v1254_v15  ;;  %1603 = vmatmul.msk.f32.gmra.mxu3 %vm334_vm0, %v2086_v7 }
  0xe0   :  { %1356 = vst [vmem:[%s3318_s3 + $0x1b0] sm:$0xff] %v1163_v16 }
  0xe1   :  { %1357 = vst [vmem:[%s3318_s3 + $0x1b8] sm:$0xff] %v1164_v17  ;;  %v523_v20 = vpop.f32.mrf.mxu2 }
  0xe2   :  { %v524_v22 = vadd.f32 %v523_v20, %v2487_v63  ;;  %v636_v44 = vpop.f32.mrf.mxu3 }
  0xe3   :  { %v637_v24 = vadd.f32 %v636_v44, %v2487_v63  ;;  %v478_v25 = vpop.f32.mrf.mxu0  ;;  %v591_v28 = vpop.f32.mrf.mxu1 }
  0xe4   :  { %v1259_v32 = vmax.f32 %v524_v22, 0.0  ;;  %v479_v7 = vadd.f32 %v478_v25, %v2227_v51  ;;  %v592_v37 = vadd.f32 %v591_v28, %v2227_v51  ;;  %v2565_v25 = vpop.permute.xlu1 %316 }
  0xe5   :  { %v1260_v42 = vmax.f32 %v637_v24, 0.0  ;;  %1636 = vmatmul.msk.f32.gmra.mxu0 %vm334_vm0, %v2103_v11 }
  0xe6   :  { %1452 = vst [vmem:[%s3318_s3 + $0x4b0] sm:$0xff] %v1259_v32  ;;  %v1169_v26 = vmax.f32 %v479_v7, 0.0  ;;  %v1170_v46 = vmax.f32 %v592_v37, 0.0  ;;  %1572 = vmatmul.msk.f32.gmra.mxu2 %vm334_vm0, %v2103_v11  ;;  %1668 = vmatmul.msk.f32.gmra.mxu1 %vm334_vm0, %v2103_v11 }
  0xe7   :  { %1453 = vst [vmem:[%s3318_s3 + $0x4b8] sm:$0xff] %v1260_v42  ;;  %1604 = vmatmul.msk.f32.gmra.mxu3 %vm334_vm0, %v2103_v11 }
  0xe8   :  { %1362 = vst [vmem:[%s3318_s3 + $0x1e0] sm:$0xff] %v1169_v26 }
  0xe9   :  { %1363 = vst [vmem:[%s3318_s3 + $0x1e8] sm:$0xff] %v1170_v46  ;;  %v526_v54 = vpop.f32.mrf.mxu2 }
  0xea   :  { %v527_v55 = vadd.f32 %v526_v54, %v2513_v53  ;;  %v639_v56 = vpop.f32.mrf.mxu3 }
  0xeb   :  { %v640_v58 = vadd.f32 %v639_v56, %v2513_v53  ;;  %v481_v8 = vpop.f32.mrf.mxu0  ;;  %v594_v62 = vpop.f32.mrf.mxu1 }
  0xec   :  { %v1265_v0 = vmax.f32 %v527_v55, 0.0  ;;  %v482_v11 = vadd.f32 %v481_v8, %v2223_v50  ;;  %v595_v3 = vadd.f32 %v594_v62, %v2223_v50  ;;  %v2591_v8 = vpop.permute.xlu2 %321 }
  0xed   :  { %v1266_v4 = vmax.f32 %v640_v58, 0.0  ;;  %1637 = vmatmul.msk.f32.gmra.mxu0 %vm334_vm0, %v2126_v18 }
  0xee   :  { %1458 = vst [vmem:[%s3318_s3 + $0x4e0] sm:$0xff] %v1265_v0  ;;  %v1175_v39 = vmax.f32 %v482_v11, 0.0  ;;  %v1176_v6 = vmax.f32 %v595_v3, 0.0  ;;  %1573 = vmatmul.msk.f32.gmra.mxu2 %vm334_vm0, %v2126_v18  ;;  %1669 = vmatmul.msk.f32.gmra.mxu1 %vm334_vm0, %v2126_v18 }
  0xef   :  { %1459 = vst [vmem:[%s3318_s3 + $0x4e8] sm:$0xff] %v1266_v4  ;;  %1605 = vmatmul.msk.f32.gmra.mxu3 %vm334_vm0, %v2126_v18 }
  0xf0   :  { %1368 = vst [vmem:[%s3318_s3 + $0x210] sm:$0xff] %v1175_v39 }
  0xf1   :  { %1369 = vst [vmem:[%s3318_s3 + $0x218] sm:$0xff] %v1176_v6  ;;  %v529_v10 = vpop.f32.mrf.mxu2 }
  0xf2   :  { %v530_v21 = vadd.f32 %v529_v10, %v2539_v40  ;;  %v642_v59 = vpop.f32.mrf.mxu3 }
  0xf3   :  { %v643_v13 = vadd.f32 %v642_v59, %v2539_v40  ;;  %v484_v15 = vpop.f32.mrf.mxu0  ;;  %v597_v16 = vpop.f32.mrf.mxu1 }
  0xf4   :  { %v1271_v17 = vmax.f32 %v530_v21, 0.0  ;;  %v485_v18 = vadd.f32 %v484_v15, %v2255_v1  ;;  %v598_v20 = vadd.f32 %v597_v16, %v2255_v1  ;;  %v2617_v15 = vpop.permute.xlu0 %326 }
  0xf5   :  { %v1272_v22 = vmax.f32 %v643_v13, 0.0  ;;  %1638 = vmatmul.msk.f32.gmra.mxu0 %vm334_vm0, %v2149_v27 }
  0xf6   :  { %1464 = vst [vmem:[%s3318_s3 + $0x510] sm:$0xff] %v1271_v17  ;;  %v1181_v44 = vmax.f32 %v485_v18, 0.0  ;;  %v1182_v24 = vmax.f32 %v598_v20, 0.0  ;;  %1574 = vmatmul.msk.f32.gmra.mxu2 %vm334_vm0, %v2149_v27  ;;  %1670 = vmatmul.msk.f32.gmra.mxu1 %vm334_vm0, %v2149_v27 }
  0xf7   :  { %1465 = vst [vmem:[%s3318_s3 + $0x518] sm:$0xff] %v1272_v22  ;;  %1606 = vmatmul.msk.f32.gmra.mxu3 %vm334_vm0, %v2149_v27 }
  0xf8   :  { %1374 = vst [vmem:[%s3318_s3 + $0x240] sm:$0xff] %v1181_v44 }
  0xf9   :  { %1375 = vst [vmem:[%s3318_s3 + $0x248] sm:$0xff] %v1182_v24  ;;  %v532_v28 = vpop.f32.mrf.mxu2 }
  0xfa   :  { %v533_v32 = vadd.f32 %v532_v28, %v2565_v25  ;;  %v645_v7 = vpop.f32.mrf.mxu3 }
  0xfb   :  { %v646_v37 = vadd.f32 %v645_v7, %v2565_v25  ;;  %v487_v42 = vpop.f32.mrf.mxu0  ;;  %v600_v26 = vpop.f32.mrf.mxu1 }
  0xfc   :  { %v1277_v46 = vmax.f32 %v533_v32, 0.0  ;;  %v488_v27 = vadd.f32 %v487_v42, %v2239_v60  ;;  %v601_v54 = vadd.f32 %v600_v26, %v2239_v60  ;;  %v2643_v42 = vpop.permute.xlu1 %331 }
  0xfd   :  { %v1278_v55 = vmax.f32 %v646_v37, 0.0  ;;  %1639 = vmatmul.msk.f32.gmra.mxu0 %vm334_vm0, %v2172_v33 }
  0xfe   :  { %1470 = vst [vmem:[%s3318_s3 + $0x540] sm:$0xff] %v1277_v46  ;;  %v1187_v56 = vmax.f32 %v488_v27, 0.0  ;;  %v1188_v58 = vmax.f32 %v601_v54, 0.0  ;;  %1575 = vmatmul.msk.f32.gmra.mxu2 %vm334_vm0, %v2172_v33  ;;  %1671 = vmatmul.msk.f32.gmra.mxu1 %vm334_vm0, %v2172_v33 }
  0xff   :  { %1471 = vst [vmem:[%s3318_s3 + $0x548] sm:$0xff] %v1278_v55  ;;  %1607 = vmatmul.msk.f32.gmra.mxu3 %vm334_vm0, %v2172_v33 }
 0x100   :  { %1380 = vst [vmem:[%s3318_s3 + $0x270] sm:$0xff] %v1187_v56 }
 0x101   :  { %1381 = vst [vmem:[%s3318_s3 + $0x278] sm:$0xff] %v1188_v58  ;;  %v535_v62 = vpop.f32.mrf.mxu2 }
 0x102   :  { %v536_v0 = vadd.f32 %v535_v62, %v2591_v8  ;;  %v648_v11 = vpop.f32.mrf.mxu3 }
 0x103   :  { %v649_v3 = vadd.f32 %v648_v11, %v2591_v8  ;;  %v490_v4 = vpop.f32.mrf.mxu0  ;;  %v603_v39 = vpop.f32.mrf.mxu1  ;;  %v1710_v11 = vld [vmem:[%s3317_s1 + $0x80] sm:$0xff] }
 0x104   :  { %v1283_v6 = vmax.f32 %v536_v0, 0.0  ;;  %v491_v33 = vadd.f32 %v490_v4, %v2241_v61  ;;  %v604_v10 = vadd.f32 %v603_v39, %v2241_v61 }
 0x105   :  { %v1284_v21 = vmax.f32 %v649_v3, 0.0  ;;  %1640 = vmatmul.msk.f32.gmra.mxu0 %vm334_vm0, %v2195_v41 }
 0x106   :  { %1476 = vst [vmem:[%s3318_s3 + $0x570] sm:$0xff] %v1283_v6  ;;  %v1193_v59 = vmax.f32 %v491_v33, 0.0  ;;  %v1194_v13 = vmax.f32 %v604_v10, 0.0  ;;  %1576 = vmatmul.msk.f32.gmra.mxu2 %vm334_vm0, %v2195_v41  ;;  %1672 = vmatmul.msk.f32.gmra.mxu1 %vm334_vm0, %v2195_v41 }
 0x107   :  { %1477 = vst [vmem:[%s3318_s3 + $0x578] sm:$0xff] %v1284_v21  ;;  %1608 = vmatmul.msk.f32.gmra.mxu3 %vm334_vm0, %v2195_v41 }
 0x108   :  { %1386 = vst [vmem:[%s3318_s3 + $0x2a0] sm:$0xff] %v1193_v59 }
 0x109   :  { %1387 = vst [vmem:[%s3318_s3 + $0x2a8] sm:$0xff] %v1194_v13  ;;  %v538_v16 = vpop.f32.mrf.mxu2 }
 0x10a   :  { %v539_v17 = vadd.f32 %v538_v16, %v2617_v15  ;;  %v651_v18 = vpop.f32.mrf.mxu3 }
 0x10b   :  { %v652_v20 = vadd.f32 %v651_v18, %v2617_v15  ;;  %v493_v22 = vpop.f32.mrf.mxu0  ;;  %v606_v44 = vpop.f32.mrf.mxu1 }
 0x10c   :  { %v1289_v24 = vmax.f32 %v539_v17, 0.0  ;;  %v494_v41 = vadd.f32 %v493_v22, %v2282_v19  ;;  %v607_v28 = vadd.f32 %v606_v44, %v2282_v19 }
 0x10d   :  { %v1290_v32 = vmax.f32 %v652_v20, 0.0  ;;  %1641 = vmatmul.msk.f32.gmra.mxu0 %vm334_vm0, %v2218_v48  ;;  %v1711_v20 = vld [vmem:[%s3317_s1 + $0x88] sm:$0xff] }
 0x10e   :  { %1482 = vst [vmem:[%s3318_s3 + $0x5a0] sm:$0xff] %v1289_v24  ;;  %v1199_v7 = vmax.f32 %v494_v41, 0.0  ;;  %v1200_v37 = vmax.f32 %v607_v28, 0.0  ;;  %1577 = vmatmul.msk.f32.gmra.mxu2 %vm334_vm0, %v2218_v48  ;;  %1673 = vmatmul.msk.f32.gmra.mxu1 %vm334_vm0, %v2218_v48 }
 0x10f   :  { %1483 = vst [vmem:[%s3318_s3 + $0x5a8] sm:$0xff] %v1290_v32  ;;  %1609 = vmatmul.msk.f32.gmra.mxu3 %vm334_vm0, %v2218_v48 }
 0x110   :  { %1392 = vst [vmem:[%s3318_s3 + $0x2d0] sm:$0xff] %v1199_v7 }
 0x111   :  { %1393 = vst [vmem:[%s3318_s3 + $0x2d8] sm:$0xff] %v1200_v37  ;;  %v541_v26 = vpop.f32.mrf.mxu2 }
 0x112   :  { %v542_v46 = vadd.f32 %v541_v26, %v2643_v42  ;;  %v654_v27 = vpop.f32.mrf.mxu3 }
 0x113   :  { %v655_v54 = vadd.f32 %v654_v27, %v2643_v42  ;;  %v900_v55 = vpop.f32.mrf.mxu0  ;;  %v1013_v56 = vpop.f32.mrf.mxu1 }
 0x114   :  { %v1295_v58 = vmax.f32 %v542_v46, 0.0  ;;  %v901_v48 = vadd.f32 %v900_v55, %v2163_v31  ;;  %v1014_v62 = vadd.f32 %v1013_v56, %v2163_v31 }
 0x115   :  { %v1296_v0 = vmax.f32 %v655_v54, 0.0  ;;  %1642 = vmatmul.msk.f32.gmra.mxu0 %vm334_vm0, %v1710_v11  ;;  %v1712_v54 = vld [vmem:[%s3317_s1 + $0x90] sm:$0xff] }
 0x116   :  { %1488 = vst [vmem:[%s3318_s3 + $0x5d0] sm:$0xff] %v1295_v58  ;;  %v1113_v3 = vmax.f32 %v901_v48, 0.0  ;;  %v1114_v4 = vmax.f32 %v1014_v62, 0.0  ;;  %1578 = vmatmul.msk.f32.gmra.mxu2 %vm334_vm0, %v1710_v11  ;;  %1674 = vmatmul.msk.f32.gmra.mxu1 %vm334_vm0, %v1710_v11 }
 0x117   :  { %1489 = vst [vmem:[%s3318_s3 + $0x5d8] sm:$0xff] %v1296_v0  ;;  %1610 = vmatmul.msk.f32.gmra.mxu3 %vm334_vm0, %v1710_v11 }
 0x118   :  { %1305 = vst [vmem:[%s3318_s3 + $0x20] sm:$0xff] %v1113_v3 }
 0x119   :  { %1307 = vst.msk [vmem:[%s3318_s3 + $0x28] sm:$0xff] %vm1306_vm1, %v1114_v4  ;;  %v674_v39 = vpop.f32.mrf.mxu2 }
 0x11a   :  { %v675_v6 = vadd.f32 %v674_v39, %v2163_v31  ;;  %v787_v33 = vpop.f32.mrf.mxu3 }
 0x11b   :  { %v788_v10 = vadd.f32 %v787_v33, %v2163_v31  ;;  %v903_v21 = vpop.f32.mrf.mxu0  ;;  %v1016_v59 = vpop.f32.mrf.mxu1  ;;  %v1713_v33 = vld [vmem:[%s3317_s1 + $0x98] sm:$0xff] }
 0x11c   :  { %v1111_v13 = vmax.f32 %v675_v6, 0.0  ;;  %v904_v16 = vadd.f32 %v903_v21, %v2190_v38  ;;  %v1017_v17 = vadd.f32 %v1016_v59, %v2190_v38 }
 0x11d   :  { %v1112_v18 = vmax.f32 %v788_v10, 0.0  ;;  %1643 = vmatmul.msk.f32.gmra.mxu0 %vm334_vm0, %v1711_v20 }
 0x11e   :  { %1303 = vst [vmem:[%s3318_s3 + $0x10] sm:$0xff] %v1111_v13  ;;  %v1119_v22 = vmax.f32 %v904_v16, 0.0  ;;  %v1120_v31 = vmax.f32 %v1017_v17, 0.0  ;;  %1579 = vmatmul.msk.f32.gmra.mxu2 %vm334_vm0, %v1711_v20  ;;  %1675 = vmatmul.msk.f32.gmra.mxu1 %vm334_vm0, %v1711_v20 }
 0x11f   :  { %1304 = vst [vmem:[%s3318_s3 + $0x18] sm:$0xff] %v1112_v18  ;;  %1611 = vmatmul.msk.f32.gmra.mxu3 %vm334_vm0, %v1711_v20 }
 0x120   :  { %1312 = vst [vmem:[%s3318_s3 + $0x50] sm:$0xff] %v1119_v22 }
 0x121   :  { %1313 = vst.msk [vmem:[%s3318_s3 + $0x58] sm:$0xff] %vm1306_vm1, %v1120_v31  ;;  %v677_v44 = vpop.f32.mrf.mxu2 }
 0x122   :  { %v678_v24 = vadd.f32 %v677_v44, %v2190_v38  ;;  %v790_v41 = vpop.f32.mrf.mxu3 }
 0x123   :  { %v791_v28 = vadd.f32 %v790_v41, %v2190_v38  ;;  %v906_v32 = vpop.f32.mrf.mxu0  ;;  %v1019_v7 = vpop.f32.mrf.mxu1 }
 0x124   :  { %v1117_v37 = vmax.f32 %v678_v24, 0.0  ;;  %v907_v26 = vadd.f32 %v906_v32, %v2154_v29  ;;  %v1020_v46 = vadd.f32 %v1019_v7, %v2154_v29  ;;  %v1714_v24 = vld [vmem:[%s3317_s1 + $0xa0] sm:$0xff] }
 0x125   :  { %v1118_v27 = vmax.f32 %v791_v28, 0.0  ;;  %1644 = vmatmul.msk.f32.gmra.mxu0 %vm334_vm0, %v1712_v54 }
 0x126   :  { %1310 = vst [vmem:[%s3318_s3 + $0x40] sm:$0xff] %v1117_v37  ;;  %v1125_v55 = vmax.f32 %v907_v26, 0.0  ;;  %v1126_v38 = vmax.f32 %v1020_v46, 0.0  ;;  %1580 = vmatmul.msk.f32.gmra.mxu2 %vm334_vm0, %v1712_v54  ;;  %1676 = vmatmul.msk.f32.gmra.mxu1 %vm334_vm0, %v1712_v54 }
 0x127   :  { %1311 = vst [vmem:[%s3318_s3 + $0x48] sm:$0xff] %v1118_v27  ;;  %1612 = vmatmul.msk.f32.gmra.mxu3 %vm334_vm0, %v1712_v54 }
 0x128   :  { %1318 = vst [vmem:[%s3318_s3 + $0x80] sm:$0xff] %v1125_v55 }
 0x129   :  { %1319 = vst.msk [vmem:[%s3318_s3 + $0x88] sm:$0xff] %vm1306_vm1, %v1126_v38  ;;  %v680_v56 = vpop.f32.mrf.mxu2 }
 0x12a   :  { %v681_v58 = vadd.f32 %v680_v56, %v2154_v29  ;;  %v793_v48 = vpop.f32.mrf.mxu3  ;;  %v1715_v56 = vld [vmem:[%s3317_s1 + $0xa8] sm:$0xff] }
 0x12b   :  { %v794_v62 = vadd.f32 %v793_v48, %v2154_v29  ;;  %v909_v0 = vpop.f32.mrf.mxu0  ;;  %v1022_v11 = vpop.f32.mrf.mxu1 }
 0x12c   :  { %v1123_v3 = vmax.f32 %v681_v58, 0.0  ;;  %v910_v4 = vadd.f32 %v909_v0, %v2177_v35  ;;  %v1023_v39 = vadd.f32 %v1022_v11, %v2177_v35 }
 0x12d   :  { %v1124_v6 = vmax.f32 %v794_v62, 0.0  ;;  %1645 = vmatmul.msk.f32.gmra.mxu0 %vm334_vm0, %v1713_v33 }
 0x12e   :  { %1316 = vst [vmem:[%s3318_s3 + $0x70] sm:$0xff] %v1123_v3  ;;  %v1131_v10 = vmax.f32 %v910_v4, 0.0  ;;  %v1132_v29 = vmax.f32 %v1023_v39, 0.0  ;;  %1581 = vmatmul.msk.f32.gmra.mxu2 %vm334_vm0, %v1713_v33  ;;  %1677 = vmatmul.msk.f32.gmra.mxu1 %vm334_vm0, %v1713_v33 }
 0x12f   :  { %1317 = vst [vmem:[%s3318_s3 + $0x78] sm:$0xff] %v1124_v6  ;;  %1613 = vmatmul.msk.f32.gmra.mxu3 %vm334_vm0, %v1713_v33 }
 0x130   :  { %1324 = vst [vmem:[%s3318_s3 + $0xb0] sm:$0xff] %v1131_v10 }
 0x131   :  { %1325 = vst.msk [vmem:[%s3318_s3 + $0xb8] sm:$0xff] %vm1306_vm1, %v1132_v29  ;;  %v683_v21 = vpop.f32.mrf.mxu2  ;;  %v1716_v29 = vld [vmem:[%s3317_s1 + $0xb0] sm:$0xff] }
 0x132   :  { %v684_v59 = vadd.f32 %v683_v21, %v2177_v35  ;;  %v796_v13 = vpop.f32.mrf.mxu3 }
 0x133   :  { %v797_v16 = vadd.f32 %v796_v13, %v2177_v35  ;;  %v912_v17 = vpop.f32.mrf.mxu0  ;;  %v1025_v18 = vpop.f32.mrf.mxu1 }
 0x134   :  { %v1129_v20 = vmax.f32 %v684_v59, 0.0  ;;  %v913_v22 = vadd.f32 %v912_v17, %v2156_v30  ;;  %v1026_v31 = vadd.f32 %v1025_v18, %v2156_v30 }
 0x135   :  { %v1130_v44 = vmax.f32 %v797_v16, 0.0  ;;  %1646 = vmatmul.msk.f32.gmra.mxu0 %vm334_vm0, %v1714_v24 }
 0x136   :  { %1322 = vst [vmem:[%s3318_s3 + $0xa0] sm:$0xff] %v1129_v20  ;;  %v1137_v41 = vmax.f32 %v913_v22, 0.0  ;;  %v1138_v35 = vmax.f32 %v1026_v31, 0.0  ;;  %1582 = vmatmul.msk.f32.gmra.mxu2 %vm334_vm0, %v1714_v24  ;;  %1678 = vmatmul.msk.f32.gmra.mxu1 %vm334_vm0, %v1714_v24 }
 0x137   :  { %1323 = vst [vmem:[%s3318_s3 + $0xa8] sm:$0xff] %v1130_v44  ;;  %1614 = vmatmul.msk.f32.gmra.mxu3 %vm334_vm0, %v1714_v24 }
 0x138   :  { %1330 = vst [vmem:[%s3318_s3 + $0xe0] sm:$0xff] %v1137_v41  ;;  %v1717_v41 = vld [vmem:[%s3317_s1 + $0xb8] sm:$0xff] }
 0x139   :  { %1331 = vst.msk [vmem:[%s3318_s3 + $0xe8] sm:$0xff] %vm1306_vm1, %v1138_v35  ;;  %v686_v28 = vpop.f32.mrf.mxu2 }
 0x13a   :  { %v687_v32 = vadd.f32 %v686_v28, %v2156_v30  ;;  %v799_v7 = vpop.f32.mrf.mxu3 }
 0x13b   :  { %v800_v37 = vadd.f32 %v799_v7, %v2156_v30  ;;  %v915_v26 = vpop.f32.mrf.mxu0  ;;  %v1028_v46 = vpop.f32.mrf.mxu1 }
 0x13c   :  { %v1135_v27 = vmax.f32 %v687_v32, 0.0  ;;  %v916_v54 = vadd.f32 %v915_v26, %v2179_v36  ;;  %v1029_v55 = vadd.f32 %v1028_v46, %v2179_v36 }
 0x13d   :  { %v1136_v38 = vmax.f32 %v800_v37, 0.0  ;;  %1647 = vmatmul.msk.f32.gmra.mxu0 %vm334_vm0, %v1715_v56 }
 0x13e   :  { %1328 = vst [vmem:[%s3318_s3 + $0xd0] sm:$0xff] %v1135_v27  ;;  %v1143_v58 = vmax.f32 %v916_v54, 0.0  ;;  %v1144_v30 = vmax.f32 %v1029_v55, 0.0  ;;  %1583 = vmatmul.msk.f32.gmra.mxu2 %vm334_vm0, %v1715_v56  ;;  %1679 = vmatmul.msk.f32.gmra.mxu1 %vm334_vm0, %v1715_v56 }
 0x13f   :  { %1329 = vst [vmem:[%s3318_s3 + $0xd8] sm:$0xff] %v1136_v38  ;;  %1615 = vmatmul.msk.f32.gmra.mxu3 %vm334_vm0, %v1715_v56  ;;  %v1718_v56 = vld [vmem:[%s3317_s1 + $0xc0] sm:$0xff] }
 0x140   :  { %1336 = vst [vmem:[%s3318_s3 + $0x110] sm:$0xff] %v1143_v58 }
 0x141   :  { %1337 = vst.msk [vmem:[%s3318_s3 + $0x118] sm:$0xff] %vm1306_vm1, %v1144_v30  ;;  %v689_v48 = vpop.f32.mrf.mxu2 }
 0x142   :  { %v690_v62 = vadd.f32 %v689_v48, %v2179_v36  ;;  %v802_v0 = vpop.f32.mrf.mxu3 }
 0x143   :  { %v803_v11 = vadd.f32 %v802_v0, %v2179_v36  ;;  %v918_v3 = vpop.f32.mrf.mxu0  ;;  %v1031_v4 = vpop.f32.mrf.mxu1 }
 0x144   :  { %v1141_v39 = vmax.f32 %v690_v62, 0.0  ;;  %v919_v6 = vadd.f32 %v918_v3, %v2213_v47  ;;  %v1032_v33 = vadd.f32 %v1031_v4, %v2213_v47 }
 0x145   :  { %v1142_v10 = vmax.f32 %v803_v11, 0.0  ;;  %1648 = vmatmul.msk.f32.gmra.mxu0 %vm334_vm0, %v1716_v29 }
 0x146   :  { %1334 = vst [vmem:[%s3318_s3 + $0x100] sm:$0xff] %v1141_v39  ;;  %v1149_v21 = vmax.f32 %v919_v6, 0.0  ;;  %v1150_v36 = vmax.f32 %v1032_v33, 0.0  ;;  %1584 = vmatmul.msk.f32.gmra.mxu2 %vm334_vm0, %v1716_v29  ;;  %1680 = vmatmul.msk.f32.gmra.mxu1 %vm334_vm0, %v1716_v29 }
 0x147   :  { %1335 = vst [vmem:[%s3318_s3 + $0x108] sm:$0xff] %v1142_v10  ;;  %1616 = vmatmul.msk.f32.gmra.mxu3 %vm334_vm0, %v1716_v29  ;;  %v1719_v10 = vld [vmem:[%s3317_s1 + $0xc8] sm:$0xff] }
 0x148   :  { %1342 = vst [vmem:[%s3318_s3 + $0x140] sm:$0xff] %v1149_v21 }
 0x149   :  { %1343 = vst.msk [vmem:[%s3318_s3 + $0x148] sm:$0xff] %vm1306_vm1, %v1150_v36  ;;  %v692_v59 = vpop.f32.mrf.mxu2 }
 0x14a   :  { %v693_v13 = vadd.f32 %v692_v59, %v2213_v47  ;;  %v805_v16 = vpop.f32.mrf.mxu3 }
 0x14b   :  { %v806_v17 = vadd.f32 %v805_v16, %v2213_v47  ;;  %v921_v18 = vpop.f32.mrf.mxu0  ;;  %v1034_v20 = vpop.f32.mrf.mxu1 }
 0x14c   :  { %v1147_v22 = vmax.f32 %v693_v13, 0.0  ;;  %v922_v31 = vadd.f32 %v921_v18, %v2204_v45  ;;  %v1035_v44 = vadd.f32 %v1034_v20, %v2204_v45 }
 0x14d   :  { %v1148_v24 = vmax.f32 %v806_v17, 0.0  ;;  %1649 = vmatmul.msk.f32.gmra.mxu0 %vm334_vm0, %v1717_v41 }
 0x14e   :  { %1340 = vst [vmem:[%s3318_s3 + $0x130] sm:$0xff] %v1147_v22  ;;  %v1155_v35 = vmax.f32 %v922_v31, 0.0  ;;  %v1156_v47 = vmax.f32 %v1035_v44, 0.0  ;;  %1585 = vmatmul.msk.f32.gmra.mxu2 %vm334_vm0, %v1717_v41  ;;  %1681 = vmatmul.msk.f32.gmra.mxu1 %vm334_vm0, %v1717_v41  ;;  %v1720_v44 = vld [vmem:[%s3317_s1 + $0xd0] sm:$0xff] }
 0x14f   :  { %1341 = vst [vmem:[%s3318_s3 + $0x138] sm:$0xff] %v1148_v24  ;;  %1617 = vmatmul.msk.f32.gmra.mxu3 %vm334_vm0, %v1717_v41 }
 0x150   :  { %1348 = vst [vmem:[%s3318_s3 + $0x170] sm:$0xff] %v1155_v35 }
 0x151   :  { %1349 = vst.msk [vmem:[%s3318_s3 + $0x178] sm:$0xff] %vm1306_vm1, %v1156_v47  ;;  %v695_v28 = vpop.f32.mrf.mxu2 }
 0x152   :  { %v696_v32 = vadd.f32 %v695_v28, %v2204_v45  ;;  %v808_v7 = vpop.f32.mrf.mxu3 }
 0x153   :  { %v809_v37 = vadd.f32 %v808_v7, %v2204_v45  ;;  %v924_v26 = vpop.f32.mrf.mxu0  ;;  %v1037_v46 = vpop.f32.mrf.mxu1 }
 0x154   :  { %v1153_v27 = vmax.f32 %v696_v32, 0.0  ;;  %v925_v54 = vadd.f32 %v924_v26, %v2200_v43  ;;  %v1038_v55 = vadd.f32 %v1037_v46, %v2200_v43 }
 0x155   :  { %v1154_v38 = vmax.f32 %v809_v37, 0.0  ;;  %1650 = vmatmul.msk.f32.gmra.mxu0 %vm334_vm0, %v1718_v56 }
 0x156   :  { %1346 = vst [vmem:[%s3318_s3 + $0x160] sm:$0xff] %v1153_v27  ;;  %v1161_v58 = vmax.f32 %v925_v54, 0.0  ;;  %v1162_v45 = vmax.f32 %v1038_v55, 0.0  ;;  %1586 = vmatmul.msk.f32.gmra.mxu2 %vm334_vm0, %v1718_v56  ;;  %1682 = vmatmul.msk.f32.gmra.mxu1 %vm334_vm0, %v1718_v56  ;;  %v1721_v54 = vld [vmem:[%s3317_s1 + $0xd8] sm:$0xff] }
 0x157   :  { %1347 = vst [vmem:[%s3318_s3 + $0x168] sm:$0xff] %v1154_v38  ;;  %1618 = vmatmul.msk.f32.gmra.mxu3 %vm334_vm0, %v1718_v56 }
 0x158   :  { %1354 = vst [vmem:[%s3318_s3 + $0x1a0] sm:$0xff] %v1161_v58 }
 0x159   :  { %1355 = vst.msk [vmem:[%s3318_s3 + $0x1a8] sm:$0xff] %vm1306_vm1, %v1162_v45  ;;  %v698_v30 = vpop.f32.mrf.mxu2 }
 0x15a   :  { %v699_v48 = vadd.f32 %v698_v30, %v2200_v43  ;;  %v811_v62 = vpop.f32.mrf.mxu3 }
 0x15b   :  { %v812_v0 = vadd.f32 %v811_v62, %v2200_v43  ;;  %v927_v11 = vpop.f32.mrf.mxu0  ;;  %v1040_v3 = vpop.f32.mrf.mxu1 }
 0x15c   :  { %v1159_v4 = vmax.f32 %v699_v48, 0.0  ;;  %v928_v39 = vadd.f32 %v927_v11, %v2233_v52  ;;  %v1041_v6 = vadd.f32 %v1040_v3, %v2233_v52 }
 0x15d   :  { %v1160_v33 = vmax.f32 %v812_v0, 0.0  ;;  %1651 = vmatmul.msk.f32.gmra.mxu0 %vm334_vm0, %v1719_v10 }
 0x15e   :  { %1352 = vst [vmem:[%s3318_s3 + $0x190] sm:$0xff] %v1159_v4  ;;  %v1167_v29 = vmax.f32 %v928_v39, 0.0  ;;  %v1168_v43 = vmax.f32 %v1041_v6, 0.0  ;;  %1587 = vmatmul.msk.f32.gmra.mxu2 %vm334_vm0, %v1719_v10  ;;  %1683 = vmatmul.msk.f32.gmra.mxu1 %vm334_vm0, %v1719_v10  ;;  %v1722_v4 = vld [vmem:[%s3317_s1 + $0xe0] sm:$0xff] }
 0x15f   :  { %1353 = vst [vmem:[%s3318_s3 + $0x198] sm:$0xff] %v1160_v33  ;;  %1619 = vmatmul.msk.f32.gmra.mxu3 %vm334_vm0, %v1719_v10 }
 0x160   :  { %1360 = vst [vmem:[%s3318_s3 + $0x1d0] sm:$0xff] %v1167_v29 }
 0x161   :  { %1361 = vst.msk [vmem:[%s3318_s3 + $0x1d8] sm:$0xff] %vm1306_vm1, %v1168_v43  ;;  %v701_v21 = vpop.f32.mrf.mxu2 }
 0x162   :  { %v702_v36 = vadd.f32 %v701_v21, %v2233_v52  ;;  %v814_v59 = vpop.f32.mrf.mxu3 }
 0x163   :  { %v815_v13 = vadd.f32 %v814_v59, %v2233_v52  ;;  %v930_v16 = vpop.f32.mrf.mxu0  ;;  %v1043_v17 = vpop.f32.mrf.mxu1 }
 0x164   :  { %v1165_v18 = vmax.f32 %v702_v36, 0.0  ;;  %v931_v20 = vadd.f32 %v930_v16, %v2227_v51  ;;  %v1044_v22 = vadd.f32 %v1043_v17, %v2227_v51  ;;  %v1723_v17 = vld [vmem:[%s3317_s1 + $0xe8] sm:$0xff] }
 0x165   :  { %v1166_v31 = vmax.f32 %v815_v13, 0.0  ;;  %1652 = vmatmul.msk.f32.gmra.mxu0 %vm334_vm0, %v1720_v44 }
 0x166   :  { %1358 = vst [vmem:[%s3318_s3 + $0x1c0] sm:$0xff] %v1165_v18  ;;  %v1173_v24 = vmax.f32 %v931_v20, 0.0  ;;  %v1174_v52 = vmax.f32 %v1044_v22, 0.0  ;;  %1588 = vmatmul.msk.f32.gmra.mxu2 %vm334_vm0, %v1720_v44  ;;  %1684 = vmatmul.msk.f32.gmra.mxu1 %vm334_vm0, %v1720_v44 }
 0x167   :  { %1359 = vst [vmem:[%s3318_s3 + $0x1c8] sm:$0xff] %v1166_v31  ;;  %1620 = vmatmul.msk.f32.gmra.mxu3 %vm334_vm0, %v1720_v44 }
 0x168   :  { %1366 = vst [vmem:[%s3318_s3 + $0x200] sm:$0xff] %v1173_v24 }
 0x169   :  { %1367 = vst.msk [vmem:[%s3318_s3 + $0x208] sm:$0xff] %vm1306_vm1, %v1174_v52  ;;  %v704_v41 = vpop.f32.mrf.mxu2 }
 0x16a   :  { %v705_v35 = vadd.f32 %v704_v41, %v2227_v51  ;;  %v817_v47 = vpop.f32.mrf.mxu3 }
 0x16b   :  { %v818_v28 = vadd.f32 %v817_v47, %v2227_v51  ;;  %v933_v32 = vpop.f32.mrf.mxu0  ;;  %v1046_v7 = vpop.f32.mrf.mxu1 }
 0x16c   :  { %v1171_v37 = vmax.f32 %v705_v35, 0.0  ;;  %v934_v26 = vadd.f32 %v933_v32, %v2223_v50  ;;  %v1047_v46 = vadd.f32 %v1046_v7, %v2223_v50  ;;  %v1724_v32 = vld [vmem:[%s3317_s1 + $0xf0] sm:$0xff] }
 0x16d   :  { %v1172_v27 = vmax.f32 %v818_v28, 0.0  ;;  %1653 = vmatmul.msk.f32.gmra.mxu0 %vm334_vm0, %v1721_v54 }
 0x16e   :  { %1364 = vst [vmem:[%s3318_s3 + $0x1f0] sm:$0xff] %v1171_v37  ;;  %v1179_v55 = vmax.f32 %v934_v26, 0.0  ;;  %v1180_v51 = vmax.f32 %v1047_v46, 0.0  ;;  %1589 = vmatmul.msk.f32.gmra.mxu2 %vm334_vm0, %v1721_v54  ;;  %1685 = vmatmul.msk.f32.gmra.mxu1 %vm334_vm0, %v1721_v54 }
 0x16f   :  { %1365 = vst [vmem:[%s3318_s3 + $0x1f8] sm:$0xff] %v1172_v27  ;;  %1621 = vmatmul.msk.f32.gmra.mxu3 %vm334_vm0, %v1721_v54 }
 0x170   :  { %1372 = vst [vmem:[%s3318_s3 + $0x230] sm:$0xff] %v1179_v55 }
 0x171   :  { %1373 = vst.msk [vmem:[%s3318_s3 + $0x238] sm:$0xff] %vm1306_vm1, %v1180_v51  ;;  %v707_v38 = vpop.f32.mrf.mxu2 }
 0x172   :  { %v708_v56 = vadd.f32 %v707_v38, %v2223_v50  ;;  %v820_v58 = vpop.f32.mrf.mxu3 }
 0x173   :  { %v821_v45 = vadd.f32 %v820_v58, %v2223_v50  ;;  %v936_v30 = vpop.f32.mrf.mxu0  ;;  %v1049_v48 = vpop.f32.mrf.mxu1 }
 0x174   :  { %v1177_v62 = vmax.f32 %v708_v56, 0.0  ;;  %v937_v0 = vadd.f32 %v936_v30, %v2255_v1  ;;  %v1050_v11 = vadd.f32 %v1049_v48, %v2255_v1 }
 0x175   :  { %v1178_v3 = vmax.f32 %v821_v45, 0.0  ;;  %1654 = vmatmul.msk.f32.gmra.mxu0 %vm334_vm0, %v1722_v4  ;;  %v1725_v45 = vld [vmem:[%s3317_s1 + $0xf8] sm:$0xff] }
 0x176   :  { %1370 = vst [vmem:[%s3318_s3 + $0x220] sm:$0xff] %v1177_v62  ;;  %v1185_v39 = vmax.f32 %v937_v0, 0.0  ;;  %v1186_v50 = vmax.f32 %v1050_v11, 0.0  ;;  %1590 = vmatmul.msk.f32.gmra.mxu2 %vm334_vm0, %v1722_v4  ;;  %1686 = vmatmul.msk.f32.gmra.mxu1 %vm334_vm0, %v1722_v4 }
 0x177   :  { %1371 = vst [vmem:[%s3318_s3 + $0x228] sm:$0xff] %v1178_v3  ;;  %1622 = vmatmul.msk.f32.gmra.mxu3 %vm334_vm0, %v1722_v4 }
 0x178   :  { %1378 = vst [vmem:[%s3318_s3 + $0x260] sm:$0xff] %v1185_v39 }
 0x179   :  { %1379 = vst.msk [vmem:[%s3318_s3 + $0x268] sm:$0xff] %vm1306_vm1, %v1186_v50  ;;  %v710_v6 = vpop.f32.mrf.mxu2 }
 0x17a   :  { %v711_v33 = vadd.f32 %v710_v6, %v2255_v1  ;;  %v823_v10 = vpop.f32.mrf.mxu3 }
 0x17b   :  { %v824_v29 = vadd.f32 %v823_v10, %v2255_v1  ;;  %v939_v43 = vpop.f32.mrf.mxu0  ;;  %v1052_v21 = vpop.f32.mrf.mxu1 }
 0x17c   :  { %v1183_v36 = vmax.f32 %v711_v33, 0.0  ;;  %v940_v59 = vadd.f32 %v939_v43, %v2239_v60  ;;  %v1053_v13 = vadd.f32 %v1052_v21, %v2239_v60 }
 0x17d   :  { %v1184_v16 = vmax.f32 %v824_v29, 0.0  ;;  %1655 = vmatmul.msk.f32.gmra.mxu0 %vm334_vm0, %v1723_v17 }
 0x17e   :  { %1376 = vst [vmem:[%s3318_s3 + $0x250] sm:$0xff] %v1183_v36  ;;  %v1191_v18 = vmax.f32 %v940_v59, 0.0  ;;  %v1192_v1 = vmax.f32 %v1053_v13, 0.0  ;;  %1591 = vmatmul.msk.f32.gmra.mxu2 %vm334_vm0, %v1723_v17  ;;  %1687 = vmatmul.msk.f32.gmra.mxu1 %vm334_vm0, %v1723_v17 }
 0x17f   :  { %1377 = vst [vmem:[%s3318_s3 + $0x258] sm:$0xff] %v1184_v16  ;;  %1623 = vmatmul.msk.f32.gmra.mxu3 %vm334_vm0, %v1723_v17 }
 0x180   :  { %1384 = vst [vmem:[%s3318_s3 + $0x290] sm:$0xff] %v1191_v18 }
 0x181   :  { %1385 = vst.msk [vmem:[%s3318_s3 + $0x298] sm:$0xff] %vm1306_vm1, %v1192_v1  ;;  %v713_v20 = vpop.f32.mrf.mxu2 }
 0x182   :  { %v714_v22 = vadd.f32 %v713_v20, %v2239_v60  ;;  %v826_v31 = vpop.f32.mrf.mxu3 }
 0x183   :  { %v827_v44 = vadd.f32 %v826_v31, %v2239_v60  ;;  %v942_v24 = vpop.f32.mrf.mxu0  ;;  %v1055_v52 = vpop.f32.mrf.mxu1 }
 0x184   :  { %v1189_v41 = vmax.f32 %v714_v22, 0.0  ;;  %v943_v35 = vadd.f32 %v942_v24, %v2241_v61  ;;  %v1056_v47 = vadd.f32 %v1055_v52, %v2241_v61 }
 0x185   :  { %v1190_v28 = vmax.f32 %v827_v44, 0.0  ;;  %1656 = vmatmul.msk.f32.gmra.mxu0 %vm334_vm0, %v1724_v32 }
 0x186   :  { %1382 = vst [vmem:[%s3318_s3 + $0x280] sm:$0xff] %v1189_v41  ;;  %v1197_v7 = vmax.f32 %v943_v35, 0.0  ;;  %v1198_v60 = vmax.f32 %v1056_v47, 0.0  ;;  %1592 = vmatmul.msk.f32.gmra.mxu2 %vm334_vm0, %v1724_v32  ;;  %1688 = vmatmul.msk.f32.gmra.mxu1 %vm334_vm0, %v1724_v32 }
 0x187   :  { %1383 = vst [vmem:[%s3318_s3 + $0x288] sm:$0xff] %v1190_v28  ;;  %1624 = vmatmul.msk.f32.gmra.mxu3 %vm334_vm0, %v1724_v32 }
 0x188   :  { %1390 = vst [vmem:[%s3318_s3 + $0x2c0] sm:$0xff] %v1197_v7 }
 0x189   :  { %1391 = vst.msk [vmem:[%s3318_s3 + $0x2c8] sm:$0xff] %vm1306_vm1, %v1198_v60  ;;  %v716_v37 = vpop.f32.mrf.mxu2 }
 0x18a   :  { %v717_v26 = vadd.f32 %v716_v37, %v2241_v61  ;;  %v829_v46 = vpop.f32.mrf.mxu3 }
 0x18b   :  { %v830_v27 = vadd.f32 %v829_v46, %v2241_v61  ;;  %v945_v54 = vpop.f32.mrf.mxu0  ;;  %v1058_v55 = vpop.f32.mrf.mxu1 }
 0x18c   :  { %v1195_v51 = vmax.f32 %v717_v26, 0.0  ;;  %v946_v38 = vadd.f32 %v945_v54, %v2282_v19  ;;  %v1059_v56 = vadd.f32 %v1058_v55, %v2282_v19 }
 0x18d   :  { %v1196_v58 = vmax.f32 %v830_v27, 0.0  ;;  %1657 = vmatmul.msk.f32.gmra.mxu0 %vm334_vm0, %v1725_v45 }
 0x18e   :  { %1388 = vst [vmem:[%s3318_s3 + $0x2b0] sm:$0xff] %v1195_v51  ;;  %v1203_v30 = vmax.f32 %v946_v38, 0.0  ;;  %v1204_v61 = vmax.f32 %v1059_v56, 0.0  ;;  %1593 = vmatmul.msk.f32.gmra.mxu2 %vm334_vm0, %v1725_v45  ;;  %1689 = vmatmul.msk.f32.gmra.mxu1 %vm334_vm0, %v1725_v45 }
 0x18f   :  { %1389 = vst [vmem:[%s3318_s3 + $0x2b8] sm:$0xff] %v1196_v58  ;;  %1625 = vmatmul.msk.f32.gmra.mxu3 %vm334_vm0, %v1725_v45 }
 0x190   :  { %1396 = vst [vmem:[%s3318_s3 + $0x2f0] sm:$0xff] %v1203_v30 }
 0x191   :  { %1397 = vst.msk [vmem:[%s3318_s3 + $0x2f8] sm:$0xff] %vm1306_vm1, %v1204_v61  ;;  %v719_v48 = vpop.f32.mrf.mxu2 }
 0x192   :  { %v720_v62 = vadd.f32 %v719_v48, %v2282_v19  ;;  %v832_v0 = vpop.f32.mrf.mxu3 }
 0x193   :  { %v833_v11 = vadd.f32 %v832_v0, %v2282_v19  ;;  %v948_v3 = vpop.f32.mrf.mxu0  ;;  %v1061_v4 = vpop.f32.mrf.mxu1 }
 0x194   :  { %v1201_v39 = vmax.f32 %v720_v62, 0.0  ;;  %v949_v50 = vadd.f32 %v948_v3, %v2261_v9  ;;  %v1062_v6 = vadd.f32 %v1061_v4, %v2261_v9 }
 0x195   :  { %v1202_v33 = vmax.f32 %v833_v11, 0.0 }
 0x196   :  { %1394 = vst [vmem:[%s3318_s3 + $0x2e0] sm:$0xff] %v1201_v39  ;;  %v1209_v10 = vmax.f32 %v949_v50, 0.0  ;;  %v1210_v29 = vmax.f32 %v1062_v6, 0.0 }
 0x197   :  { %1395 = vst [vmem:[%s3318_s3 + $0x2e8] sm:$0xff] %v1202_v33 }
 0x198   :  { %1402 = vst [vmem:[%s3318_s3 + $0x320] sm:$0xff] %v1209_v10 }
 0x199   :  { %1403 = vst.msk [vmem:[%s3318_s3 + $0x328] sm:$0xff] %vm1306_vm1, %v1210_v29  ;;  %v722_v19 = vpop.f32.mrf.mxu2 }
 0x19a   :  { %v723_v43 = vadd.f32 %v722_v19, %v2261_v9  ;;  %v835_v21 = vpop.f32.mrf.mxu3 }
 0x19b   :  { %v836_v36 = vadd.f32 %v835_v21, %v2261_v9  ;;  %v951_v59 = vpop.f32.mrf.mxu0  ;;  %v1064_v13 = vpop.f32.mrf.mxu1 }
 0x19c   :  { %v1207_v16 = vmax.f32 %v723_v43, 0.0  ;;  %v952_v17 = vadd.f32 %v951_v59, %v2271_v14  ;;  %v1065_v18 = vadd.f32 %v1064_v13, %v2271_v14 }
 0x19d   :  { %v1208_v1 = vmax.f32 %v836_v36, 0.0 }
 0x19e   :  { %1400 = vst [vmem:[%s3318_s3 + $0x310] sm:$0xff] %v1207_v16  ;;  %v1215_v20 = vmax.f32 %v952_v17, 0.0  ;;  %v1216_v22 = vmax.f32 %v1065_v18, 0.0 }
 0x19f   :  { %1401 = vst [vmem:[%s3318_s3 + $0x318] sm:$0xff] %v1208_v1 }
 0x1a0   :  { %1408 = vst [vmem:[%s3318_s3 + $0x350] sm:$0xff] %v1215_v20 }
 0x1a1   :  { %1409 = vst.msk [vmem:[%s3318_s3 + $0x358] sm:$0xff] %vm1306_vm1, %v1216_v22  ;;  %v725_v9 = vpop.f32.mrf.mxu2 }
 0x1a2   :  { %v726_v31 = vadd.f32 %v725_v9, %v2271_v14  ;;  %v838_v44 = vpop.f32.mrf.mxu3 }
 0x1a3   :  { %v839_v24 = vadd.f32 %v838_v44, %v2271_v14  ;;  %v954_v52 = vpop.f32.mrf.mxu0  ;;  %v1067_v41 = vpop.f32.mrf.mxu1 }
 0x1a4   :  { %v1213_v35 = vmax.f32 %v726_v31, 0.0  ;;  %v955_v47 = vadd.f32 %v954_v52, %v2311_v49  ;;  %v1068_v28 = vadd.f32 %v1067_v41, %v2311_v49 }
 0x1a5   :  { %v1214_v32 = vmax.f32 %v839_v24, 0.0 }
 0x1a6   :  { %1406 = vst [vmem:[%s3318_s3 + $0x340] sm:$0xff] %v1213_v35  ;;  %v1221_v7 = vmax.f32 %v955_v47, 0.0  ;;  %v1222_v60 = vmax.f32 %v1068_v28, 0.0 }
 0x1a7   :  { %1407 = vst [vmem:[%s3318_s3 + $0x348] sm:$0xff] %v1214_v32 }
 0x1a8   :  { %1414 = vst [vmem:[%s3318_s3 + $0x380] sm:$0xff] %v1221_v7 }
 0x1a9   :  { %1415 = vst.msk [vmem:[%s3318_s3 + $0x388] sm:$0xff] %vm1306_vm1, %v1222_v60  ;;  %v728_v14 = vpop.f32.mrf.mxu2 }
 0x1aa   :  { %v729_v37 = vadd.f32 %v728_v14, %v2311_v49  ;;  %v841_v26 = vpop.f32.mrf.mxu3 }
 0x1ab   :  { %v842_v46 = vadd.f32 %v841_v26, %v2311_v49  ;;  %v957_v27 = vpop.f32.mrf.mxu0  ;;  %v1070_v54 = vpop.f32.mrf.mxu1 }
 0x1ac   :  { %v1219_v55 = vmax.f32 %v729_v37, 0.0  ;;  %v958_v51 = vadd.f32 %v957_v27, %v2328_v5  ;;  %v1071_v38 = vadd.f32 %v1070_v54, %v2328_v5 }
 0x1ad   :  { %v1220_v56 = vmax.f32 %v842_v46, 0.0 }
 0x1ae   :  { %1412 = vst [vmem:[%s3318_s3 + $0x370] sm:$0xff] %v1219_v55  ;;  %v1227_v58 = vmax.f32 %v958_v51, 0.0  ;;  %v1228_v45 = vmax.f32 %v1071_v38, 0.0 }
 0x1af   :  { %1413 = vst [vmem:[%s3318_s3 + $0x378] sm:$0xff] %v1220_v56 }
 0x1b0   :  { %1420 = vst [vmem:[%s3318_s3 + $0x3b0] sm:$0xff] %v1227_v58 }
 0x1b1   :  { %1421 = vst.msk [vmem:[%s3318_s3 + $0x3b8] sm:$0xff] %vm1306_vm1, %v1228_v45  ;;  %v731_v49 = vpop.f32.mrf.mxu2 }
 0x1b2   :  { %v732_v30 = vadd.f32 %v731_v49, %v2328_v5  ;;  %v844_v61 = vpop.f32.mrf.mxu3 }
 0x1b3   :  { %v845_v48 = vadd.f32 %v844_v61, %v2328_v5  ;;  %v960_v62 = vpop.f32.mrf.mxu0  ;;  %v1073_v0 = vpop.f32.mrf.mxu1 }
 0x1b4   :  { %v1225_v11 = vmax.f32 %v732_v30, 0.0  ;;  %v961_v3 = vadd.f32 %v960_v62, %v2357_v23  ;;  %v1074_v4 = vadd.f32 %v1073_v0, %v2357_v23 }
 0x1b5   :  { %v1226_v39 = vmax.f32 %v845_v48, 0.0 }
 0x1b6   :  { %1418 = vst [vmem:[%s3318_s3 + $0x3a0] sm:$0xff] %v1225_v11  ;;  %v1233_v50 = vmax.f32 %v961_v3, 0.0  ;;  %v1234_v6 = vmax.f32 %v1074_v4, 0.0 }
 0x1b7   :  { %1419 = vst [vmem:[%s3318_s3 + $0x3a8] sm:$0xff] %v1226_v39 }
 0x1b8   :  { %1426 = vst [vmem:[%s3318_s3 + $0x3e0] sm:$0xff] %v1233_v50 }
 0x1b9   :  { %1427 = vst.msk [vmem:[%s3318_s3 + $0x3e8] sm:$0xff] %vm1306_vm1, %v1234_v6  ;;  %v734_v5 = vpop.f32.mrf.mxu2 }
 0x1ba   :  { %v735_v33 = vadd.f32 %v734_v5, %v2357_v23  ;;  %v847_v10 = vpop.f32.mrf.mxu3 }
 0x1bb   :  { %v848_v29 = vadd.f32 %v847_v10, %v2357_v23  ;;  %v963_v19 = vpop.f32.mrf.mxu0  ;;  %v1076_v43 = vpop.f32.mrf.mxu1 }
 0x1bc   :  { %v1231_v21 = vmax.f32 %v735_v33, 0.0  ;;  %v964_v36 = vadd.f32 %v963_v19, %v2383_v57  ;;  %v1077_v59 = vadd.f32 %v1076_v43, %v2383_v57 }
 0x1bd   :  { %v1232_v13 = vmax.f32 %v848_v29, 0.0 }
 0x1be   :  { %1424 = vst [vmem:[%s3318_s3 + $0x3d0] sm:$0xff] %v1231_v21  ;;  %v1239_v16 = vmax.f32 %v964_v36, 0.0  ;;  %v1240_v17 = vmax.f32 %v1077_v59, 0.0 }
 0x1bf   :  { %1425 = vst [vmem:[%s3318_s3 + $0x3d8] sm:$0xff] %v1232_v13 }
 0x1c0   :  { %1432 = vst [vmem:[%s3318_s3 + $0x410] sm:$0xff] %v1239_v16 }
 0x1c1   :  { %1433 = vst.msk [vmem:[%s3318_s3 + $0x418] sm:$0xff] %vm1306_vm1, %v1240_v17  ;;  %v737_v23 = vpop.f32.mrf.mxu2 }
 0x1c2   :  { %v738_v18 = vadd.f32 %v737_v23, %v2383_v57  ;;  %v850_v1 = vpop.f32.mrf.mxu3 }
 0x1c3   :  { %v851_v20 = vadd.f32 %v850_v1, %v2383_v57  ;;  %v966_v22 = vpop.f32.mrf.mxu0  ;;  %v1079_v9 = vpop.f32.mrf.mxu1 }
 0x1c4   :  { %v1237_v31 = vmax.f32 %v738_v18, 0.0  ;;  %v967_v44 = vadd.f32 %v966_v22, %v2409_v12  ;;  %v1080_v24 = vadd.f32 %v1079_v9, %v2409_v12 }
 0x1c5   :  { %v1238_v52 = vmax.f32 %v851_v20, 0.0 }
 0x1c6   :  { %1430 = vst [vmem:[%s3318_s3 + $0x400] sm:$0xff] %v1237_v31  ;;  %v1245_v41 = vmax.f32 %v967_v44, 0.0  ;;  %v1246_v35 = vmax.f32 %v1080_v24, 0.0 }
 0x1c7   :  { %1431 = vst [vmem:[%s3318_s3 + $0x408] sm:$0xff] %v1238_v52 }
 0x1c8   :  { %1438 = vst [vmem:[%s3318_s3 + $0x440] sm:$0xff] %v1245_v41 }
 0x1c9   :  { %1439 = vst.msk [vmem:[%s3318_s3 + $0x448] sm:$0xff] %vm1306_vm1, %v1246_v35  ;;  %v740_v57 = vpop.f32.mrf.mxu2 }
 0x1ca   :  { %v741_v47 = vadd.f32 %v740_v57, %v2409_v12  ;;  %v853_v28 = vpop.f32.mrf.mxu3 }
 0x1cb   :  { %v854_v32 = vadd.f32 %v853_v28, %v2409_v12  ;;  %v969_v7 = vpop.f32.mrf.mxu0  ;;  %v1082_v60 = vpop.f32.mrf.mxu1 }
 0x1cc   :  { %v1243_v14 = vmax.f32 %v741_v47, 0.0  ;;  %v970_v37 = vadd.f32 %v969_v7, %v2435_v34  ;;  %v1083_v26 = vadd.f32 %v1082_v60, %v2435_v34 }
 0x1cd   :  { %v1244_v46 = vmax.f32 %v854_v32, 0.0 }
 0x1ce   :  { %1436 = vst [vmem:[%s3318_s3 + $0x430] sm:$0xff] %v1243_v14  ;;  %v1251_v27 = vmax.f32 %v970_v37, 0.0  ;;  %v1252_v54 = vmax.f32 %v1083_v26, 0.0 }
 0x1cf   :  { %1437 = vst [vmem:[%s3318_s3 + $0x438] sm:$0xff] %v1244_v46 }
 0x1d0   :  { %1444 = vst [vmem:[%s3318_s3 + $0x470] sm:$0xff] %v1251_v27 }
 0x1d1   :  { %1445 = vst.msk [vmem:[%s3318_s3 + $0x478] sm:$0xff] %vm1306_vm1, %v1252_v54  ;;  %v743_v12 = vpop.f32.mrf.mxu2 }
 0x1d2   :  { %v744_v55 = vadd.f32 %v743_v12, %v2435_v34  ;;  %v856_v51 = vpop.f32.mrf.mxu3 }
 0x1d3   :  { %v857_v38 = vadd.f32 %v856_v51, %v2435_v34  ;;  %v972_v56 = vpop.f32.mrf.mxu0  ;;  %v1085_v58 = vpop.f32.mrf.mxu1 }
 0x1d4   :  { %v1249_v45 = vmax.f32 %v744_v55, 0.0  ;;  %v973_v49 = vadd.f32 %v972_v56, %v2461_v2  ;;  %v1086_v30 = vadd.f32 %v1085_v58, %v2461_v2 }
 0x1d5   :  { %v1250_v61 = vmax.f32 %v857_v38, 0.0 }
 0x1d6   :  { %1442 = vst [vmem:[%s3318_s3 + $0x460] sm:$0xff] %v1249_v45  ;;  %v1257_v48 = vmax.f32 %v973_v49, 0.0  ;;  %v1258_v62 = vmax.f32 %v1086_v30, 0.0 }
 0x1d7   :  { %1443 = vst [vmem:[%s3318_s3 + $0x468] sm:$0xff] %v1250_v61 }
 0x1d8   :  { %1450 = vst [vmem:[%s3318_s3 + $0x4a0] sm:$0xff] %v1257_v48 }
 0x1d9   :  { %1451 = vst.msk [vmem:[%s3318_s3 + $0x4a8] sm:$0xff] %vm1306_vm1, %v1258_v62  ;;  %v746_v34 = vpop.f32.mrf.mxu2 }
 0x1da   :  { %v747_v0 = vadd.f32 %v746_v34, %v2461_v2  ;;  %v859_v11 = vpop.f32.mrf.mxu3 }
 0x1db   :  { %v860_v3 = vadd.f32 %v859_v11, %v2461_v2  ;;  %v975_v4 = vpop.f32.mrf.mxu0  ;;  %v1088_v39 = vpop.f32.mrf.mxu1 }
 0x1dc   :  { %v1255_v50 = vmax.f32 %v747_v0, 0.0  ;;  %v976_v6 = vadd.f32 %v975_v4, %v2487_v63  ;;  %v1089_v5 = vadd.f32 %v1088_v39, %v2487_v63 }
 0x1dd   :  { %v1256_v33 = vmax.f32 %v860_v3, 0.0 }
 0x1de   :  { %1448 = vst [vmem:[%s3318_s3 + $0x490] sm:$0xff] %v1255_v50  ;;  %v1263_v10 = vmax.f32 %v976_v6, 0.0  ;;  %v1264_v29 = vmax.f32 %v1089_v5, 0.0 }
 0x1df   :  { %1449 = vst [vmem:[%s3318_s3 + $0x498] sm:$0xff] %v1256_v33 }
 0x1e0   :  { %1456 = vst [vmem:[%s3318_s3 + $0x4d0] sm:$0xff] %v1263_v10 }
 0x1e1   :  { %1457 = vst.msk [vmem:[%s3318_s3 + $0x4d8] sm:$0xff] %vm1306_vm1, %v1264_v29  ;;  %v749_v2 = vpop.f32.mrf.mxu2 }
 0x1e2   :  { %v750_v19 = vadd.f32 %v749_v2, %v2487_v63  ;;  %v862_v43 = vpop.f32.mrf.mxu3 }
 0x1e3   :  { %v863_v21 = vadd.f32 %v862_v43, %v2487_v63  ;;  %v978_v36 = vpop.f32.mrf.mxu0  ;;  %v1091_v59 = vpop.f32.mrf.mxu1 }
 0x1e4   :  { %v1261_v13 = vmax.f32 %v750_v19, 0.0  ;;  %v979_v16 = vadd.f32 %v978_v36, %v2513_v53  ;;  %v1092_v17 = vadd.f32 %v1091_v59, %v2513_v53 }
 0x1e5   :  { %v1262_v23 = vmax.f32 %v863_v21, 0.0 }
 0x1e6   :  { %1454 = vst [vmem:[%s3318_s3 + $0x4c0] sm:$0xff] %v1261_v13  ;;  %v1269_v18 = vmax.f32 %v979_v16, 0.0  ;;  %v1270_v1 = vmax.f32 %v1092_v17, 0.0 }
 0x1e7   :  { %1455 = vst [vmem:[%s3318_s3 + $0x4c8] sm:$0xff] %v1262_v23 }
 0x1e8   :  { %1462 = vst [vmem:[%s3318_s3 + $0x500] sm:$0xff] %v1269_v18 }
 0x1e9   :  { %1463 = vst.msk [vmem:[%s3318_s3 + $0x508] sm:$0xff] %vm1306_vm1, %v1270_v1  ;;  %v752_v63 = vpop.f32.mrf.mxu2 }
 0x1ea   :  { %v753_v20 = vadd.f32 %v752_v63, %v2513_v53  ;;  %v865_v22 = vpop.f32.mrf.mxu3 }
 0x1eb   :  { %v866_v9 = vadd.f32 %v865_v22, %v2513_v53  ;;  %v981_v31 = vpop.f32.mrf.mxu0  ;;  %v1094_v44 = vpop.f32.mrf.mxu1 }
 0x1ec   :  { %v1267_v24 = vmax.f32 %v753_v20, 0.0  ;;  %v982_v52 = vadd.f32 %v981_v31, %v2539_v40  ;;  %v1095_v41 = vadd.f32 %v1094_v44, %v2539_v40 }
 0x1ed   :  { %v1268_v35 = vmax.f32 %v866_v9, 0.0 }
 0x1ee   :  { %1460 = vst [vmem:[%s3318_s3 + $0x4f0] sm:$0xff] %v1267_v24  ;;  %v1275_v57 = vmax.f32 %v982_v52, 0.0  ;;  %v1276_v47 = vmax.f32 %v1095_v41, 0.0 }
 0x1ef   :  { %1461 = vst [vmem:[%s3318_s3 + $0x4f8] sm:$0xff] %v1268_v35 }
 0x1f0   :  { %1468 = vst [vmem:[%s3318_s3 + $0x530] sm:$0xff] %v1275_v57 }
 0x1f1   :  { %1469 = vst.msk [vmem:[%s3318_s3 + $0x538] sm:$0xff] %vm1306_vm1, %v1276_v47  ;;  %v755_v53 = vpop.f32.mrf.mxu2 }
 0x1f2   :  { %v756_v28 = vadd.f32 %v755_v53, %v2539_v40  ;;  %v868_v32 = vpop.f32.mrf.mxu3 }
 0x1f3   :  { %v869_v7 = vadd.f32 %v868_v32, %v2539_v40  ;;  %v984_v60 = vpop.f32.mrf.mxu0  ;;  %v1097_v14 = vpop.f32.mrf.mxu1 }
 0x1f4   :  { %v1273_v37 = vmax.f32 %v756_v28, 0.0  ;;  %v985_v26 = vadd.f32 %v984_v60, %v2565_v25  ;;  %v1098_v46 = vadd.f32 %v1097_v14, %v2565_v25 }
 0x1f5   :  { %v1274_v27 = vmax.f32 %v869_v7, 0.0 }
 0x1f6   :  { %1466 = vst [vmem:[%s3318_s3 + $0x520] sm:$0xff] %v1273_v37  ;;  %v1281_v54 = vmax.f32 %v985_v26, 0.0  ;;  %v1282_v12 = vmax.f32 %v1098_v46, 0.0 }
 0x1f7   :  { %1467 = vst [vmem:[%s3318_s3 + $0x528] sm:$0xff] %v1274_v27 }
 0x1f8   :  { %1474 = vst [vmem:[%s3318_s3 + $0x560] sm:$0xff] %v1281_v54 }
 0x1f9   :  { %1475 = vst.msk [vmem:[%s3318_s3 + $0x568] sm:$0xff] %vm1306_vm1, %v1282_v12  ;;  %v758_v40 = vpop.f32.mrf.mxu2 }
 0x1fa   :  { %v759_v55 = vadd.f32 %v758_v40, %v2565_v25  ;;  %v871_v51 = vpop.f32.mrf.mxu3 }
 0x1fb   :  { %v872_v38 = vadd.f32 %v871_v51, %v2565_v25  ;;  %v987_v56 = vpop.f32.mrf.mxu0  ;;  %v1100_v58 = vpop.f32.mrf.mxu1 }
 0x1fc   :  { %v1279_v45 = vmax.f32 %v759_v55, 0.0  ;;  %v988_v49 = vadd.f32 %v987_v56, %v2591_v8  ;;  %v1101_v30 = vadd.f32 %v1100_v58, %v2591_v8 }
 0x1fd   :  { %v1280_v61 = vmax.f32 %v872_v38, 0.0 }
 0x1fe   :  { %1472 = vst [vmem:[%s3318_s3 + $0x550] sm:$0xff] %v1279_v45  ;;  %v1287_v48 = vmax.f32 %v988_v49, 0.0  ;;  %v1288_v62 = vmax.f32 %v1101_v30, 0.0 }
 0x1ff   :  { %1473 = vst [vmem:[%s3318_s3 + $0x558] sm:$0xff] %v1280_v61 }
 0x200   :  { %1480 = vst [vmem:[%s3318_s3 + $0x590] sm:$0xff] %v1287_v48 }
 0x201   :  { %1481 = vst.msk [vmem:[%s3318_s3 + $0x598] sm:$0xff] %vm1306_vm1, %v1288_v62  ;;  %v761_v25 = vpop.f32.mrf.mxu2 }
 0x202   :  { %v762_v34 = vadd.f32 %v761_v25, %v2591_v8  ;;  %v874_v0 = vpop.f32.mrf.mxu3 }
 0x203   :  { %v875_v11 = vadd.f32 %v874_v0, %v2591_v8  ;;  %v990_v3 = vpop.f32.mrf.mxu0  ;;  %v1103_v4 = vpop.f32.mrf.mxu1 }
 0x204   :  { %v1285_v39 = vmax.f32 %v762_v34, 0.0  ;;  %v991_v50 = vadd.f32 %v990_v3, %v2617_v15  ;;  %v1104_v6 = vadd.f32 %v1103_v4, %v2617_v15 }
 0x205   :  { %v1286_v5 = vmax.f32 %v875_v11, 0.0 }
 0x206   :  { %1478 = vst [vmem:[%s3318_s3 + $0x580] sm:$0xff] %v1285_v39  ;;  %v1293_v33 = vmax.f32 %v991_v50, 0.0  ;;  %v1294_v10 = vmax.f32 %v1104_v6, 0.0 }
 0x207   :  { %1479 = vst [vmem:[%s3318_s3 + $0x588] sm:$0xff] %v1286_v5 }
 0x208   :  { %1486 = vst [vmem:[%s3318_s3 + $0x5c0] sm:$0xff] %v1293_v33 }
 0x209   :  { %1487 = vst.msk [vmem:[%s3318_s3 + $0x5c8] sm:$0xff] %vm1306_vm1, %v1294_v10  ;;  %v764_v8 = vpop.f32.mrf.mxu2 }
 0x20a   :  { %v765_v29 = vadd.f32 %v764_v8, %v2617_v15  ;;  %v877_v2 = vpop.f32.mrf.mxu3 }
 0x20b   :  { %v878_v19 = vadd.f32 %v877_v2, %v2617_v15  ;;  %v993_v43 = vpop.f32.mrf.mxu0  ;;  %v1106_v21 = vpop.f32.mrf.mxu1 }
 0x20c   :  { %v1291_v36 = vmax.f32 %v765_v29, 0.0  ;;  %v994_v59 = vadd.f32 %v993_v43, %v2643_v42  ;;  %v1107_v13 = vadd.f32 %v1106_v21, %v2643_v42 }
 0x20d   :  { %v1292_v16 = vmax.f32 %v878_v19, 0.0 }
 0x20e   :  { %1484 = vst [vmem:[%s3318_s3 + $0x5b0] sm:$0xff] %v1291_v36  ;;  %v1299_v17 = vmax.f32 %v994_v59, 0.0  ;;  %v1300_v23 = vmax.f32 %v1107_v13, 0.0 }
 0x20f   :  { %1485 = vst [vmem:[%s3318_s3 + $0x5b8] sm:$0xff] %v1292_v16 }
 0x210   :  { %1492 = vst [vmem:[%s3318_s3 + $0x5f0] sm:$0xff] %v1299_v17 }
 0x211   :  { %1493 = vst.msk [vmem:[%s3318_s3 + $0x5f8] sm:$0xff] %vm1306_vm1, %v1300_v23  ;;  %v767_v15 = vpop.f32.mrf.mxu2 }
 0x212   :  { %v768_v18 = vadd.f32 %v767_v15, %v2643_v42  ;;  %v880_v1 = vpop.f32.mrf.mxu3 }
 0x213   :  { %v881_v63 = vadd.f32 %v880_v1, %v2643_v42 }
 0x214   :  { %v1297_v20 = vmax.f32 %v768_v18, 0.0 }
 0x215   :  { %v1298_v22 = vmax.f32 %v881_v63, 0.0 }
 0x216   :  { %1490 = vst [vmem:[%s3318_s3 + $0x5e0] sm:$0xff] %v1297_v20 }
 0x217   :  { %1491 = vst [vmem:[%s3318_s3 + $0x5e8] sm:$0xff] %v1298_v22 }

</bundles_post_ra>
